<compile_context>
chip_gen: v7x
topology: tpu7x:2x2x1
jax: 0.10.0
libtpu: 0.0.40
codegen_flags: <defaults>
</compile_context>

<pallas_src>
import jax
import jax.numpy as jnp
from jax.experimental import pallas as pl
from jax.experimental.pallas import tpu as pltpu


def _round_up(x, m):
    return ((x + m - 1) // m) * m


def _mlp_kernel(s_ref, a_ref, l_ref,
                w1s_ref, w1a_ref, w1l_ref, b1_ref,
                w2_ref, b2_ref,
                w3_ref, b3_ref,
                o_ref):
    """One batch tile through the fused 3-layer MLP (all in VMEM)."""
    cdt = w2_ref.dtype  # MXU operand dtype (f32 or bf16); accumulation is f32

    s = s_ref[...].astype(cdt)
    a = a_ref[...].astype(cdt)
    l = l_ref[...].astype(cdt)

    # Layer 1: concat fused as three partial matmuls against row blocks of w1.
    h1 = jnp.dot(s, w1s_ref[...], preferred_element_type=jnp.float32)
    h1 = h1 + jnp.dot(a, w1a_ref[...], preferred_element_type=jnp.float32)
    h1 = h1 + jnp.dot(l, w1l_ref[...], preferred_element_type=jnp.float32)
    h1 = jnp.maximum(h1 + b1_ref[...], 0.0)

    # Layer 2: Linear + ReLU.
    h2 = jnp.dot(h1.astype(cdt), w2_ref[...],
                 preferred_element_type=jnp.float32) + b2_ref[...]
    h2 = jnp.maximum(h2, 0.0)

    # Layer 3: Linear (final ReLU was popped in the PyTorch module).
    y = jnp.dot(h2.astype(cdt), w3_ref[...],
                preferred_element_type=jnp.float32) + b3_ref[...]
    o_ref[...] = y.astype(o_ref.dtype)


def deocdeer_forward(states, actions, latents, params, *, bm=256,
                     matmul_dtype=None):
    """Fused MLP forward.

    params = (w1, b1, w2, b2, w3, b3) with w_i stored as (in, out).
    bm: requested batch tile (multiple of 8); shrunk automatically for tiny B.
    matmul_dtype: optional MXU operand dtype (e.g. jnp.bfloat16 on v6e/v7x).
    """
    w1, b1, w2, b2, w3, b3 = params
    B, s_dim = states.shape
    a_dim = actions.shape[-1]
    l_dim = latents.shape[-1]
    d_in = s_dim + a_dim + l_dim
    assert w1.shape[0] == d_in, (w1.shape, d_in)
    h0, h1d, d_out = w1.shape[1], w2.shape[1], w3.shape[1]

    # Split first-layer weight rows to fuse the concat into the kernel.
    w1s = w1[:s_dim]
    w1a = w1[s_dim:s_dim + a_dim]
    w1l = w1[s_dim + a_dim:]

    if matmul_dtype is not None:
        w1s = w1s.astype(matmul_dtype)
        w1a = w1a.astype(matmul_dtype)
        w1l = w1l.astype(matmul_dtype)
        w2 = w2.astype(matmul_dtype)
        w3 = w3.astype(matmul_dtype)

    # Biases as (1, dim) f32 rows: broadcast add in f32 epilogue.
    b1 = b1.reshape(1, h0).astype(jnp.float32)
    b2 = b2.reshape(1, h1d).astype(jnp.float32)
    b3 = b3.reshape(1, d_out).astype(jnp.float32)

    # Effective batch tile: multiple of 8 (sublane), no larger than needed,
    # capped at `bm` to bound vreg/VMEM pressure.  Pad B up to a tile multiple.
    bm_eff = min(max(bm, 8), _round_up(max(B, 1), 8))
    bm_eff = _round_up(bm_eff, 8)
    b_pad = _round_up(B, bm_eff)
    if b_pad != B:
        pad = ((0, b_pad - B), (0, 0))
        states = jnp.pad(states, pad)
        actions = jnp.pad(actions, pad)
        latents = jnp.pad(latents, pad)

    grid = (b_pad // bm_eff,)

    def batch_spec(d):
        return pl.BlockSpec((bm_eff, d), lambda i: (i, 0))

    def full_spec(r, c):
        # Full-array block, constant index_map -> VMEM-resident, DMA'd once.
        return pl.BlockSpec((r, c), lambda i: (0, 0))

    out = pl.pallas_call(
        _mlp_kernel,
        out_shape=jax.ShapeDtypeStruct((b_pad, d_out), states.dtype),
        grid_spec=pltpu.PrefetchScalarGridSpec(
            num_scalar_prefetch=0,
            grid=grid,
            in_specs=[
                batch_spec(s_dim),            # states tile
                batch_spec(a_dim),            # actions tile
                batch_spec(l_dim),            # latents tile
                full_spec(s_dim, h0),         # w1 (states rows)
                full_spec(a_dim, h0),         # w1 (actions rows)
                full_spec(l_dim, h0),         # w1 (latents rows)
                full_spec(1, h0),             # b1
                full_spec(h0, h1d),           # w2
                full_spec(1, h1d),            # b2
                full_spec(h1d, d_out),        # w3
                full_spec(1, d_out),          # b3
            ],
            out_specs=pl.BlockSpec((bm_eff, d_out), lambda i: (i, 0)),
        ),
        compiler_params=pltpu.CompilerParams(
            dimension_semantics=("parallel",),   # shard batch across TCs (v7x)
        ),
    )(states, actions, latents, w1s, w1a, w1l, b1, w2, b2, w3, b3)

    if b_pad != B:
        out = out[:B]
    return out


def init_params(key, state_dim, action_dim, latent_dim, hidden_dims=(256, 256)):
    """Synthetic init mirroring nn.Linear shapes, stored as (in, out)."""
    n_layers = [state_dim + action_dim + latent_dim, *hidden_dims, state_dim]
    params = []
    for l1, l2 in zip(n_layers[:-1], n_layers[1:]):
        key, kw, kb = jax.random.split(key, 3)
        bound = 1.0 / jnp.sqrt(l1)
        w = jax.random.uniform(kw, (l1, l2), jnp.float32, -bound, bound)
        b = jax.random.uniform(kb, (l2,), jnp.float32, -bound, bound)
        params.extend([w, b])
    return tuple(params)


def _reference(states, actions, latents, params):
    w1, b1, w2, b2, w3, b3 = params
    hp = jax.lax.Precision.HIGHEST
    x = jnp.concatenate([states, actions, latents], axis=-1)
    h = jnp.maximum(jnp.dot(x, w1, precision=hp) + b1, 0.0)
    h = jnp.maximum(jnp.dot(h, w2, precision=hp) + b2, 0.0)
    return jnp.dot(h, w3, precision=hp) + b3


if __name__ == "__main__":
    key = jax.random.PRNGKey(0)
    kp, ks, ka, kl = jax.random.split(key, 4)

    state_dim, action_dim, latent_dim = 8, 4, 4
    hidden_dims = (256, 256)   # PyTorch module default
    params = init_params(kp, state_dim, action_dim, latent_dim, hidden_dims)

    def make_inputs(b, k):
        k1, k2, k3 = jax.random.split(k, 3)
        return (jax.random.normal(k1, (b, state_dim), jnp.float32),
                jax.random.normal(k2, (b, action_dim), jnp.float32),
                jax.random.normal(k3, (b, latent_dim), jnp.float32))

    # Case 1: batch a multiple of the tile -> 2 parallel grid steps, f32 MXU.
    s, a, l = make_inputs(512, ks)
    out = jax.block_until_ready(deocdeer_forward(s, a, l, params, bm=256))
    ref = _reference(s, a, l, params)
    assert out.shape == (512, state_dim), out.shape
    assert jnp.allclose(out, ref, atol=5e-3, rtol=5e-3), "f32 mismatch"

    # Case 2: same data with bf16 MXU operands (f32 accumulate / epilogue).
    out_bf = jax.block_until_ready(
        deocdeer_forward(s, a, l, params, bm=256, matmul_dtype=jnp.bfloat16))
    assert out_bf.shape == (512, state_dim), out_bf.shape
    assert jnp.allclose(out_bf, ref, atol=1e-1, rtol=1e-1), "bf16 mismatch"

    # Case 3: ragged batch (not a multiple of the tile) exercises padding.
    s3, a3, l3 = make_inputs(100, ka)
    out3 = jax.block_until_ready(deocdeer_forward(s3, a3, l3, params, bm=256))
    ref3 = _reference(s3, a3, l3, params)
    assert out3.shape == (100, state_dim), out3.shape
    assert jnp.allclose(out3, ref3, atol=5e-3, rtol=5e-3), "ragged mismatch"

    print("KERNEL_OK")
</pallas_src>

<mosaic_0001>
module attributes {stable_mosaic.version = 11 : i64} {
  func.func @_mlp_kernel(%arg0: i32, %arg1: memref<256x8xf32, #tpu.memory_space<vmem>>, %arg2: memref<256x4xf32, #tpu.memory_space<vmem>>, %arg3: memref<256x4xf32, #tpu.memory_space<vmem>>, %arg4: memref<8x256xf32, #tpu.memory_space<vmem>>, %arg5: memref<4x256xf32, #tpu.memory_space<vmem>>, %arg6: memref<4x256xf32, #tpu.memory_space<vmem>>, %arg7: memref<1x256xf32, #tpu.memory_space<vmem>>, %arg8: memref<256x256xf32, #tpu.memory_space<vmem>>, %arg9: memref<1x256xf32, #tpu.memory_space<vmem>>, %arg10: memref<256x8xf32, #tpu.memory_space<vmem>>, %arg11: memref<1x8xf32, #tpu.memory_space<vmem>>, %arg12: memref<256x8xf32, #tpu.memory_space<vmem>>) attributes {dimension_semantics = [#tpu.dimension_semantics<parallel>], iteration_bounds = array<i64: 2>, scalar_prefetch = 0 : i64, scratch_operands = 0 : i64, tpu.core_type = #tpu.core_type<tc>, window_params = [{transform_indices = @transform_0, window_bounds = array<i64: 256, 8>}, {transform_indices = @transform_1, window_bounds = array<i64: 256, 4>}, {transform_indices = @transform_2, window_bounds = array<i64: 256, 4>}, {pipeline_mode = #tpu.pipeline_mode<synchronous>, transform_indices = @transform_3, window_bounds = array<i64: 8, 256>}, {pipeline_mode = #tpu.pipeline_mode<synchronous>, transform_indices = @transform_4, window_bounds = array<i64: 4, 256>}, {pipeline_mode = #tpu.pipeline_mode<synchronous>, transform_indices = @transform_5, window_bounds = array<i64: 4, 256>}, {pipeline_mode = #tpu.pipeline_mode<synchronous>, transform_indices = @transform_6, window_bounds = array<i64: 1, 256>}, {pipeline_mode = #tpu.pipeline_mode<synchronous>, transform_indices = @transform_7, window_bounds = array<i64: 256, 256>}, {pipeline_mode = #tpu.pipeline_mode<synchronous>, transform_indices = @transform_8, window_bounds = array<i64: 1, 256>}, {pipeline_mode = #tpu.pipeline_mode<synchronous>, transform_indices = @transform_9, window_bounds = array<i64: 256, 8>}, {pipeline_mode = #tpu.pipeline_mode<synchronous>, transform_indices = @transform_10, window_bounds = array<i64: 1, 8>}, {transform_indices = @transform_11, window_bounds = array<i64: 256, 8>}]} {
    %c0 = arith.constant 0 : index
    %c0_0 = arith.constant 0 : index
    %0 = vector.load %arg1[%c0, %c0_0] : memref<256x8xf32, #tpu.memory_space<vmem>>, vector<256x8xf32>
    %c0_1 = arith.constant 0 : index
    %c0_2 = arith.constant 0 : index
    %1 = vector.load %arg2[%c0_1, %c0_2] : memref<256x4xf32, #tpu.memory_space<vmem>>, vector<256x4xf32>
    %c0_3 = arith.constant 0 : index
    %c0_4 = arith.constant 0 : index
    %2 = vector.load %arg3[%c0_3, %c0_4] : memref<256x4xf32, #tpu.memory_space<vmem>>, vector<256x4xf32>
    %c0_5 = arith.constant 0 : index
    %c0_6 = arith.constant 0 : index
    %3 = vector.load %arg4[%c0_5, %c0_6] : memref<8x256xf32, #tpu.memory_space<vmem>>, vector<8x256xf32>
    %cst = arith.constant dense<0.000000e+00> : vector<256x256xf32>
    %4 = tpu.matmul %0, %3, %cst {dimension_numbers = #tpu.dot_dimension_numbers<[1], [0], [0], [1], [0, 0, 1, 1], [], []>} : vector<256x8xf32>, vector<8x256xf32>, vector<256x256xf32> -> vector<256x256xf32>
    %c0_7 = arith.constant 0 : index
    %c0_8 = arith.constant 0 : index
    %5 = vector.load %arg5[%c0_7, %c0_8] : memref<4x256xf32, #tpu.memory_space<vmem>>, vector<4x256xf32>
    %cst_9 = arith.constant dense<0.000000e+00> : vector<256x256xf32>
    %6 = tpu.matmul %1, %5, %cst_9 {dimension_numbers = #tpu.dot_dimension_numbers<[1], [0], [0], [1], [0, 0, 1, 1], [], []>} : vector<256x4xf32>, vector<4x256xf32>, vector<256x256xf32> -> vector<256x256xf32>
    %7 = arith.addf %4, %6 : vector<256x256xf32>
    %c0_10 = arith.constant 0 : index
    %c0_11 = arith.constant 0 : index
    %8 = vector.load %arg6[%c0_10, %c0_11] : memref<4x256xf32, #tpu.memory_space<vmem>>, vector<4x256xf32>
    %cst_12 = arith.constant dense<0.000000e+00> : vector<256x256xf32>
    %9 = tpu.matmul %2, %8, %cst_12 {dimension_numbers = #tpu.dot_dimension_numbers<[1], [0], [0], [1], [0, 0, 1, 1], [], []>} : vector<256x4xf32>, vector<4x256xf32>, vector<256x256xf32> -> vector<256x256xf32>
    %10 = arith.addf %7, %9 : vector<256x256xf32>
    %c0_13 = arith.constant 0 : index
    %c0_14 = arith.constant 0 : index
    %11 = vector.load %arg7[%c0_13, %c0_14] : memref<1x256xf32, #tpu.memory_space<vmem>>, vector<1x256xf32>
    %12 = vector.broadcast %11 : vector<1x256xf32> to vector<256x256xf32>
    %13 = arith.addf %10, %12 : vector<256x256xf32>
    %cst_15 = arith.constant 0.000000e+00 : f32
    %14 = vector.broadcast %cst_15 : f32 to vector<256x256xf32>
    %15 = arith.maximumf %13, %14 : vector<256x256xf32>
    %c0_16 = arith.constant 0 : index
    %c0_17 = arith.constant 0 : index
    %16 = vector.load %arg8[%c0_16, %c0_17] : memref<256x256xf32, #tpu.memory_space<vmem>>, vector<256x256xf32>
    %cst_18 = arith.constant dense<0.000000e+00> : vector<256x256xf32>
    %17 = tpu.matmul %15, %16, %cst_18 {dimension_numbers = #tpu.dot_dimension_numbers<[1], [0], [0], [1], [0, 0, 1, 1], [], []>} : vector<256x256xf32>, vector<256x256xf32>, vector<256x256xf32> -> vector<256x256xf32>
    %c0_19 = arith.constant 0 : index
    %c0_20 = arith.constant 0 : index
    %18 = vector.load %arg9[%c0_19, %c0_20] : memref<1x256xf32, #tpu.memory_space<vmem>>, vector<1x256xf32>
    %19 = vector.broadcast %18 : vector<1x256xf32> to vector<256x256xf32>
    %20 = arith.addf %17, %19 : vector<256x256xf32>
    %cst_21 = arith.constant 0.000000e+00 : f32
    %21 = vector.broadcast %cst_21 : f32 to vector<256x256xf32>
    %22 = arith.maximumf %20, %21 : vector<256x256xf32>
    %c0_22 = arith.constant 0 : index
    %c0_23 = arith.constant 0 : index
    %23 = vector.load %arg10[%c0_22, %c0_23] : memref<256x8xf32, #tpu.memory_space<vmem>>, vector<256x8xf32>
    %cst_24 = arith.constant dense<0.000000e+00> : vector<256x8xf32>
    %24 = tpu.matmul %22, %23, %cst_24 {dimension_numbers = #tpu.dot_dimension_numbers<[1], [0], [0], [1], [0, 0, 1, 1], [], []>} : vector<256x256xf32>, vector<256x8xf32>, vector<256x8xf32> -> vector<256x8xf32>
    %c0_25 = arith.constant 0 : index
    %c0_26 = arith.constant 0 : index
    %25 = vector.load %arg11[%c0_25, %c0_26] : memref<1x8xf32, #tpu.memory_space<vmem>>, vector<1x8xf32>
    %26 = vector.broadcast %25 : vector<1x8xf32> to vector<256x8xf32>
    %27 = arith.addf %24, %26 : vector<256x8xf32>
    %c0_27 = arith.constant 0 : index
    %c0_28 = arith.constant 0 : index
    %28 = vector.load %arg12[%c0_27, %c0_28] : memref<256x8xf32, #tpu.memory_space<vmem>>, vector<256x8xf32>
    tpu.vector_store %arg12[%c0_27, %c0_28], %27 {strides = array<i32>} : memref<256x8xf32, #tpu.memory_space<vmem>>, vector<256x8xf32>,
    return
  }
  func.func @transform_0(%arg0: i32) -> (i32, i32) {
    %c0_i32 = arith.constant 0 : i32
    %c0_i32_0 = arith.constant 0 : i32
    return %arg0, %c0_i32 : i32, i32
  }
  func.func @transform_1(%arg0: i32) -> (i32, i32) {
    %c0_i32 = arith.constant 0 : i32
    %c0_i32_0 = arith.constant 0 : i32
    return %arg0, %c0_i32 : i32, i32
  }
  func.func @transform_2(%arg0: i32) -> (i32, i32) {
    %c0_i32 = arith.constant 0 : i32
    %c0_i32_0 = arith.constant 0 : i32
    return %arg0, %c0_i32 : i32, i32
  }
  func.func @transform_3(%arg0: i32) -> (i32, i32) {
    %c0_i32 = arith.constant 0 : i32
    %c0_i32_0 = arith.constant 0 : i32
    %c0_i32_1 = arith.constant 0 : i32
    return %c0_i32, %c0_i32_0 : i32, i32
  }
  func.func @transform_4(%arg0: i32) -> (i32, i32) {
    %c0_i32 = arith.constant 0 : i32
    %c0_i32_0 = arith.constant 0 : i32
    %c0_i32_1 = arith.constant 0 : i32
    return %c0_i32, %c0_i32_0 : i32, i32
  }
  func.func @transform_5(%arg0: i32) -> (i32, i32) {
    %c0_i32 = arith.constant 0 : i32
    %c0_i32_0 = arith.constant 0 : i32
    %c0_i32_1 = arith.constant 0 : i32
    return %c0_i32, %c0_i32_0 : i32, i32
  }
  func.func @transform_6(%arg0: i32) -> (i32, i32) {
    %c0_i32 = arith.constant 0 : i32
    %c0_i32_0 = arith.constant 0 : i32
    %c0_i32_1 = arith.constant 0 : i32
    return %c0_i32, %c0_i32_0 : i32, i32
  }
  func.func @transform_7(%arg0: i32) -> (i32, i32) {
    %c0_i32 = arith.constant 0 : i32
    %c0_i32_0 = arith.constant 0 : i32
    %c0_i32_1 = arith.constant 0 : i32
    return %c0_i32, %c0_i32_0 : i32, i32
  }
  func.func @transform_8(%arg0: i32) -> (i32, i32) {
    %c0_i32 = arith.constant 0 : i32
    %c0_i32_0 = arith.constant 0 : i32
    %c0_i32_1 = arith.constant 0 : i32
    return %c0_i32, %c0_i32_0 : i32, i32
  }
  func.func @transform_9(%arg0: i32) -> (i32, i32) {
    %c0_i32 = arith.constant 0 : i32
    %c0_i32_0 = arith.constant 0 : i32
    %c0_i32_1 = arith.constant 0 : i32
    return %c0_i32, %c0_i32_0 : i32, i32
  }
  func.func @transform_10(%arg0: i32) -> (i32, i32) {
    %c0_i32 = arith.constant 0 : i32
    %c0_i32_0 = arith.constant 0 : i32
    %c0_i32_1 = arith.constant 0 : i32
    return %c0_i32, %c0_i32_0 : i32, i32
  }
  func.func @transform_11(%arg0: i32) -> (i32, i32) {
    %c0_i32 = arith.constant 0 : i32
    %c0_i32_0 = arith.constant 0 : i32
    return %arg0, %c0_i32 : i32, i32
  }
}

</mosaic_0001>

<bundles_post_ra>
// kernel: tpu_custom_call.1
= control target key start
LH: loop header
LB: loop body
LE: loop exit
PB: predicated region body
PF: predicated region fallthrough
CT: control target
= control target key end

     0   :  { %s3025_s17 = smov 0   ;;  %s4028_s0 = inlined_call_operand.vmem [shape: f32[512,8], index: 0, kind: input, shape index: {}]   ;;  %s4029_s1 = inlined_call_operand.vmem [shape: f32[512,4], index: 1, kind: input, shape index: {}]   ;;  %s4030_s2 = inlined_call_operand.vmem [shape: f32[512,4], index: 2, kind: input, shape index: {}]   ;;  %s4031_s3 = inlined_call_operand.vmem [shape: f32[8,256], index: 3, kind: input, shape index: {}]   ;;  %s4032_s4 = inlined_call_operand.vmem [shape: f32[4,256], index: 4, kind: input, shape index: {}]   ;;  %s4033_s5 = inlined_call_operand.vmem [shape: f32[4,256], index: 5, kind: input, shape index: {}]   ;;  %s4034_s6 = inlined_call_operand.vmem [shape: f32[1,256], index: 6, kind: input, shape index: {}]   ;;  %s4035_s7 = inlined_call_operand.vmem [shape: f32[256,256], index: 7, kind: input, shape index: {}]   ;;  %s4036_s8 = inlined_call_operand.vmem [shape: f32[1,256], index: 8, kind: input, shape index: {}]   ;;  %s4037_s9 = inlined_call_operand.vmem [shape: f32[256,8], index: 9, kind: input, shape index: {}]   ;;  %s4038_s10 = inlined_call_operand.vmem [shape: f32[1,8], index: 10, kind: input, shape index: {}]   ;;  %s4039_s11 = inlined_call_operand.vmem [shape: f32[512,8], index: 11, kind: output, shape index: {}]  }
   0x1 LB: > { %s2585_s18 = sadd.s32 4294967295, %s2961_s17   ;;  %p2589_p0 = scmp.ge.s32.totalorder %s2961_s17, 1  ;;  %s2961_s17 = sphi %s3025_s17, %s21_s17  }
   0x2   : > { %p360_p1 = scmp.lt.s32.totalorder %s2961_s17, 3 }
   0x4   : > { %p361_p2 = pnand %p2589_p0, %p360_p1 }
   0x5   : > { %v532_v0 = vld [vmem:[%s4032_s4] sm:$0xff] (!%p361_p2)  ;;  %vm632_vm0 = vcmask (!%p361_p2), 1043456   ;;  %s2590_s21 = sshll.u32 (!%p361_p2), %s2585_s18, 5  ;;  %v2963_v2 = vmov (!%p361_p2), 0.0   ;;  %v531_v3 = vld [vmem:[%s4031_s3 + $0x8] sm:$0xff] (!%p361_p2)  ;;  %vm535_vm1 = vcmask (!%p361_p2), 31744  }
   0x6   : > { %364 = sbr.rel (%p361_p2) target bundleno = 986 (0x3da), region = 64  ;;  %v534_v1 = vcombine.high (!%p361_p2), %v532_v0, %v532_v0  ;;  %701 = vmatprep.mubr.f32.mxu0 (!%p361_p2), %v2963_v2  ;;  %p411_p3 = scmp.lt.s32.totalorder (!%p361_p2), %s2590_s21, 63  ;;  %797 = vmatprep.mubr.f32.mxu1 (!%p361_p2), %v2963_v2  ;;  %v3045_v4 = vld [vmem:[%s4033_s5] sm:$0xff] (!%p361_p2)  ;;  %vm894_vm2 = vcmask (!%p361_p2), 64512  }
   0x7   : > { %v530_v5 = vld [vmem:[%s4031_s3] sm:$0xff] (!%p361_p2)  ;;  %v1250_v6 = vcombine.high (!%p361_p2), %v3045_v4, %v3045_v4 }
   0x8   : > { %2598 = vmatprep.subr.msk.mxu0 (!%p361_p2), %vm632_vm0, %v534_v1  ;;  %2813 = vmatprep.subr.msk.mxu1 (!%p361_p2), %vm632_vm0, %v534_v1 }
   0x9   : > { %2599 = vmatpush1.msk.msra.mxu0 (!%p361_p2), %vm632_vm0, %v532_v0  ;;  %2814 = vmatpush1.msk.msra.mxu1 (!%p361_p2), %vm632_vm0, %v532_v0 }
   0xa   : > { %991 = vmatprep.subr.mxu0 (!%p361_p2), %v531_v3 }
   0xd   : > { %s4041_s21 = smov (!%p411_p3, %s2590_s21), 63 }
   0xe   : > { %s3050_s26 = sshll.u32 %s4041_s21, 3 }
   0xf   : > { %s3056_s29 = scalar_lea.vmem %s4029_s1, %s3050_s26  ;;  %s3114_s15 = scalar_lea.vmem %s4028_s0, %s3050_s26 }
  0x10   : > { %v466_v7 = vld [vmem:[%s3056_s29] sm:$0xff]  ;;  %v467_v8 = vld [vmem:[%s3056_s29 + $0x8] sm:$0xff]  ;;  %v468_v9 = vld [vmem:[%s3056_s29 + $0x10] sm:$0xff]  ;;  %s3261_s19 = scalar_lea.vmem %s4030_s2, %s3050_s26  ;;  %s3927_s23 = scalar_lea.vmem %s4039_s11, %s3050_s26 }
  0x11   : > { %2600 = vmatmul.mubr.msk.f32.vlgmr.msra.gmra.mrb[0].mxu0 %vm535_vm1, %v466_v7  ;;  %v469_v10 = vld [vmem:[%s3056_s29 + $0x18] sm:$0xff]  ;;  %v470_v11 = vld [vmem:[%s3056_s29 + $0x20] sm:$0xff]  ;;  %v471_v12 = vld [vmem:[%s3056_s29 + $0x28] sm:$0xff] }
  0x12   : > { %992 = vmatpush1.msra.mxu0 %v530_v5  ;;  %707 = vmatprep.mubr.f32.mxu0 %v2963_v2  ;;  %v472_v13 = vld [vmem:[%s3056_s29 + $0x30] sm:$0xff]  ;;  %v473_v14 = vld [vmem:[%s3056_s29 + $0x38] sm:$0xff]  ;;  %v474_v15 = vld [vmem:[%s3056_s29 + $0x40] sm:$0xff] }
  0x13   : > { %2664 = vmatprep.subr.msk.mxu0 %vm632_vm0, %v1250_v6  ;;  %v475_v16 = vld [vmem:[%s3056_s29 + $0x48] sm:$0xff]  ;;  %v476_v17 = vld [vmem:[%s3056_s29 + $0x50] sm:$0xff]  ;;  %v477_v18 = vld [vmem:[%s3056_s29 + $0x58] sm:$0xff] }
  0x14   : > { %v478_v19 = vld [vmem:[%s3056_s29 + $0x60] sm:$0xff]  ;;  %v479_v20 = vld [vmem:[%s3056_s29 + $0x68] sm:$0xff]  ;;  %v480_v21 = vld [vmem:[%s3056_s29 + $0x70] sm:$0xff] }
  0x15   : > { %2601 = vmatmul.mubr.msk.f32.gmra.mrb[2].mxu0 %vm535_vm1, %v467_v8  ;;  %v481_v22 = vld [vmem:[%s3056_s29 + $0x78] sm:$0xff]  ;;  %v434_v23 = vld [vmem:[%s3114_s15] sm:$0xff]  ;;  %v435_v24 = vld [vmem:[%s3114_s15 + $0x8] sm:$0xff] }
  0x16   : > { %713 = vmatprep.mubr.f32.mxu0 %v2963_v2  ;;  %v436_v25 = vld [vmem:[%s3114_s15 + $0x10] sm:$0xff]  ;;  %v437_v26 = vld [vmem:[%s3114_s15 + $0x18] sm:$0xff]  ;;  %v438_v27 = vld [vmem:[%s3114_s15 + $0x20] sm:$0xff] }
  0x17   : > { %v439_v28 = vld [vmem:[%s3114_s15 + $0x28] sm:$0xff]  ;;  %v440_v29 = vld [vmem:[%s3114_s15 + $0x30] sm:$0xff]  ;;  %v441_v30 = vld [vmem:[%s3114_s15 + $0x38] sm:$0xff] }
  0x18   : > { %v442_v31 = vld [vmem:[%s3114_s15 + $0x40] sm:$0xff]  ;;  %v443_v32 = vld [vmem:[%s3114_s15 + $0x48] sm:$0xff]  ;;  %v444_v33 = vld [vmem:[%s3114_s15 + $0x50] sm:$0xff] }
  0x19   : > { %2602 = vmatmul.mubr.msk.f32.gmra.mrb[4].mxu0 %vm535_vm1, %v468_v9  ;;  %v445_v34 = vld [vmem:[%s3114_s15 + $0x58] sm:$0xff]  ;;  %v446_v35 = vld [vmem:[%s3114_s15 + $0x60] sm:$0xff]  ;;  %v447_v36 = vld [vmem:[%s3114_s15 + $0x68] sm:$0xff] }
  0x1a   : > { %719 = vmatprep.mubr.f32.mxu0 %v2963_v2  ;;  %v448_v37 = vld [vmem:[%s3114_s15 + $0x70] sm:$0xff]  ;;  %v449_v38 = vld [vmem:[%s3114_s15 + $0x78] sm:$0xff]  ;;  %v482_v39 = vld [vmem:[%s3056_s29 + $0x80] sm:$0xff] }
  0x1b   : > { %v450_v40 = vld [vmem:[%s3114_s15 + $0x80] sm:$0xff]  ;;  %2616 = vmatmul.mubr.msk.f32.vlgmr.msra.gmra.mrb[0].mxu1 %vm535_vm1, %v482_v39  ;;  %v483_v41 = vld [vmem:[%s3056_s29 + $0x88] sm:$0xff]  ;;  %v484_v43 = vld [vmem:[%s3056_s29 + $0x90] sm:$0xff] }
  0x1c   : > { %803 = vmatprep.mubr.f32.mxu1 %v2963_v2  ;;  %v451_v42 = vld [vmem:[%s3114_s15 + $0x88] sm:$0xff]  ;;  %v452_v44 = vld [vmem:[%s3114_s15 + $0x90] sm:$0xff]  ;;  %v485_v45 = vld [vmem:[%s3056_s29 + $0x98] sm:$0xff] }
  0x1d   : > { %2603 = vmatmul.mubr.msk.f32.gmra.mrb[6].mxu0 %vm535_vm1, %v469_v10  ;;  %v453_v46 = vld [vmem:[%s3114_s15 + $0x98] sm:$0xff]  ;;  %v486_v47 = vld [vmem:[%s3056_s29 + $0xa0] sm:$0xff]  ;;  %v487_v49 = vld [vmem:[%s3056_s29 + $0xa8] sm:$0xff] }
  0x1e   : > { %725 = vmatprep.mubr.f32.mxu0 %v2963_v2  ;;  %v454_v48 = vld [vmem:[%s3114_s15 + $0xa0] sm:$0xff]  ;;  %v455_v50 = vld [vmem:[%s3114_s15 + $0xa8] sm:$0xff]  ;;  %v488_v51 = vld [vmem:[%s3056_s29 + $0xb0] sm:$0xff] }
  0x1f   : > { %2617 = vmatmul.mubr.msk.f32.gmra.mrb[2].mxu1 %vm535_vm1, %v483_v41  ;;  %v456_v52 = vld [vmem:[%s3114_s15 + $0xb0] sm:$0xff]  ;;  %v489_v53 = vld [vmem:[%s3056_s29 + $0xb8] sm:$0xff]  ;;  %v490_v55 = vld [vmem:[%s3056_s29 + $0xc0] sm:$0xff] }
  0x20   : > { %809 = vmatprep.mubr.f32.mxu1 %v2963_v2  ;;  %v457_v54 = vld [vmem:[%s3114_s15 + $0xb8] sm:$0xff]  ;;  %v458_v56 = vld [vmem:[%s3114_s15 + $0xc0] sm:$0xff]  ;;  %v491_v57 = vld [vmem:[%s3056_s29 + $0xc8] sm:$0xff] }
  0x21   : > { %2604 = vmatmul.mubr.msk.f32.gmra.mrb[8].mxu0 %vm535_vm1, %v470_v11  ;;  %v459_v58 = vld [vmem:[%s3114_s15 + $0xc8] sm:$0xff]  ;;  %v492_v59 = vld [vmem:[%s3056_s29 + $0xd0] sm:$0xff]  ;;  %v493_v61 = vld [vmem:[%s3056_s29 + $0xd8] sm:$0xff] }
  0x22   : > { %731 = vmatprep.mubr.f32.mxu0 %v2963_v2  ;;  %v460_v60 = vld [vmem:[%s3114_s15 + $0xd0] sm:$0xff]  ;;  %v461_v62 = vld [vmem:[%s3114_s15 + $0xd8] sm:$0xff]  ;;  %v494_v63 = vld [vmem:[%s3056_s29 + $0xe0] sm:$0xff] }
  0x23   : > { %2618 = vmatmul.mubr.msk.f32.gmra.mrb[4].mxu1 %vm535_vm1, %v484_v43  ;;  %v462_v0 = vld [vmem:[%s3114_s15 + $0xe0] sm:$0xff]  ;;  %v495_v1 = vld [vmem:[%s3056_s29 + $0xe8] sm:$0xff]  ;;  %v464_v5 = vld [vmem:[%s3114_s15 + $0xf0] sm:$0xff] }
  0x24   : > { %815 = vmatprep.mubr.f32.mxu1 %v2963_v2  ;;  %v463_v3 = vld [vmem:[%s3114_s15 + $0xe8] sm:$0xff]  ;;  %v497_v6 = vld [vmem:[%s3056_s29 + $0xf8] sm:$0xff]  ;;  %v498_v8 = vld [vmem:[%s3261_s19] sm:$0xff] }
  0x25   : > { %2605 = vmatmul.mubr.msk.f32.gmra.mrb[10].mxu0 %vm535_vm1, %v471_v12  ;;  %v465_v7 = vld [vmem:[%s3114_s15 + $0xf8] sm:$0xff]  ;;  %v1813_v9 = vld [vmem:[%s4035_s7 + $0x8] sm:$0xff]  ;;  %v1812_v11 = vld [vmem:[%s4035_s7] sm:$0xff] }
  0x26   : > { %737 = vmatprep.mubr.f32.mxu0 %v2963_v2  ;;  %v1815_v10 = vld [vmem:[%s4035_s7 + $0x18] sm:$0xff]  ;;  %v1828_v39 = vld [vmem:[%s4035_s7 + $0x80] sm:$0xff]  ;;  %v1833_v41 = vld [vmem:[%s4035_s7 + $0xa8] sm:$0xff] }
  0x27   : > { %2619 = vmatmul.mubr.msk.f32.gmra.mrb[6].mxu1 %vm535_vm1, %v485_v45  ;;  %v2701_v12 = vpack.c.bf16 %v1815_v10, %v1813_v9  ;;  %v506_v9 = vld [vmem:[%s3261_s19 + $0x40] sm:$0xff] }
  0x28   : > { %821 = vmatprep.mubr.f32.mxu1 %v2963_v2 }
  0x29   : > { %2606 = vmatmul.mubr.msk.f32.gmra.mrb[12].mxu0 %vm535_vm1, %v472_v13  ;;  %v1814_v13 = vld [vmem:[%s4035_s7 + $0x10] sm:$0xff]  ;;  %2702 = vmatprep.subr.bf16.mxu1 %v2701_v12 }
  0x2a   : > { %743 = vmatprep.mubr.f32.mxu0 %v2963_v2  ;;  %v1850_v12 = vld [vmem:[%s4035_s7 + $0x130] sm:$0xff] }
  0x2b   : > { %2620 = vmatmul.mubr.msk.f32.gmra.mrb[8].mxu1 %vm535_vm1, %v486_v47  ;;  %v1834_v47 = vld [vmem:[%s4035_s7 + $0xb0] sm:$0xff] }
  0x2c   : > { %827 = vmatprep.mubr.f32.mxu1 %v2963_v2 }
  0x2d   : > { %2607 = vmatmul.mubr.msk.f32.gmra.mrb[14].mxu0 %vm535_vm1, %v473_v14  ;;  %v1817_v14 = vld [vmem:[%s4035_s7 + $0x28] sm:$0xff] }
  0x2e   : > { %749 = vmatprep.mubr.f32.mxu0 %v2963_v2 }
  0x2f   : > { %2621 = vmatmul.mubr.msk.f32.gmra.mrb[10].mxu1 %vm535_vm1, %v487_v49  ;;  %v1839_v49 = vld [vmem:[%s4035_s7 + $0xd8] sm:$0xff] }
  0x30   : > { %833 = vmatprep.mubr.f32.mxu1 %v2963_v2 }
  0x31   : > { %2608 = vmatmul.mubr.msk.f32.gmra.mrb[16].mxu0 %vm535_vm1, %v474_v15  ;;  %v1819_v15 = vld [vmem:[%s4035_s7 + $0x38] sm:$0xff] }
  0x32   : > { %755 = vmatprep.mubr.f32.mxu0 %v2963_v2 }
  0x33   : > { %2622 = vmatmul.mubr.msk.f32.gmra.mrb[12].mxu1 %vm535_vm1, %v488_v51  ;;  %v503_v51 = vld [vmem:[%s3261_s19 + $0x28] sm:$0xff] }
  0x34   : > { %839 = vmatprep.mubr.f32.mxu1 %v2963_v2 }
  0x35   : > { %2609 = vmatmul.mubr.msk.f32.gmra.mrb[18].mxu0 %vm535_vm1, %v475_v16  ;;  %v2703_v16 = vpack.c.bf16 %v1814_v13, %v1812_v11  ;;  %v1848_v11 = vld [vmem:[%s4035_s7 + $0x120] sm:$0xff]  ;;  %v1853_v13 = vld [vmem:[%s4035_s7 + $0x148] sm:$0xff] }
  0x36   : > { %761 = vmatprep.mubr.f32.mxu0 %v2963_v2 }
  0x37   : > { %2623 = vmatmul.mubr.msk.f32.gmra.mrb[14].mxu1 %vm535_vm1, %v489_v53  ;;  %v1836_v53 = vld [vmem:[%s4035_s7 + $0xc0] sm:$0xff] }
  0x38   : > { %845 = vmatprep.mubr.f32.mxu1 %v2963_v2  ;;  %2704 = vmatpush1.bf16.msra.mxu1 %v2703_v16  ;;  %v507_v16 = vld [vmem:[%s3261_s19 + $0x48] sm:$0xff] }
  0x39   : > { %2610 = vmatmul.mubr.msk.f32.gmra.mrb[20].mxu0 %vm535_vm1, %v476_v17  ;;  %v2705_v17 = vpack.c.bf16 %v1819_v15, %v1817_v14  ;;  %v1855_v14 = vld [vmem:[%s4035_s7 + $0x158] sm:$0xff]  ;;  %v2739_v15 = vpack.c.bf16 %v1850_v12, %v1848_v11 }
  0x3a   : > { %767 = vmatprep.mubr.f32.mxu0 %v2963_v2 }
  0x3b   : > { %2624 = vmatmul.mubr.msk.f32.gmra.mrb[16].mxu1 %vm535_vm1, %v490_v55  ;;  %2706 = vmatprep.subr.bf16.mxu1 %v2705_v17  ;;  %v1841_v55 = vld [vmem:[%s4035_s7 + $0xe8] sm:$0xff]  ;;  %v2741_v17 = vpack.c.bf16 %v1855_v14, %v1853_v13 }
  0x3c   : > { %851 = vmatprep.mubr.f32.mxu1 %v2963_v2 }
  0x3d   : > { %2611 = vmatmul.mubr.msk.f32.gmra.mrb[22].mxu0 %vm535_vm1, %v477_v18  ;;  %v1816_v18 = vld [vmem:[%s4035_s7 + $0x20] sm:$0xff] }
  0x3e   : > { %773 = vmatprep.mubr.f32.mxu0 %v2963_v2 }
  0x3f   : > { %2625 = vmatmul.mubr.msk.f32.gmra.mrb[18].mxu1 %vm535_vm1, %v491_v57 }
  0x40   : > { %857 = vmatprep.mubr.f32.mxu1 %v2963_v2 }
  0x41   : > { %2612 = vmatmul.mubr.msk.f32.gmra.mrb[24].mxu0 %vm535_vm1, %v478_v19  ;;  %v1818_v19 = vld [vmem:[%s4035_s7 + $0x30] sm:$0xff] }
  0x42   : > { %779 = vmatprep.mubr.f32.mxu0 %v2963_v2 }
  0x43   : > { %2626 = vmatmul.mubr.msk.f32.gmra.mrb[20].mxu1 %vm535_vm1, %v492_v59 }
  0x44   : > { %863 = vmatprep.mubr.f32.mxu1 %v2963_v2 }
  0x45   : > { %2613 = vmatmul.mubr.msk.f32.gmra.mrb[26].mxu0 %vm535_vm1, %v479_v20  ;;  %v1821_v20 = vld [vmem:[%s4035_s7 + $0x48] sm:$0xff] }
  0x46   : > { %785 = vmatprep.mubr.f32.mxu0 %v2963_v2 }
  0x47   : > { %2627 = vmatmul.mubr.msk.f32.gmra.mrb[22].mxu1 %vm535_vm1, %v493_v61  ;;  %v1842_v61 = vld [vmem:[%s4035_s7 + $0xf0] sm:$0xff] }
  0x48   : > { %869 = vmatprep.mubr.f32.mxu1 %v2963_v2 }
  0x49   : > { %2614 = vmatmul.mubr.msk.f32.gmra.mrb[28].mxu0 %vm535_vm1, %v480_v21  ;;  %v1823_v21 = vld [vmem:[%s4035_s7 + $0x58] sm:$0xff] }
  0x4a   : > { %791 = vmatprep.mubr.f32.mxu0 %v2963_v2 }
  0x4b   : > { %2628 = vmatmul.mubr.msk.f32.gmra.mrb[24].mxu1 %vm535_vm1, %v494_v63  ;;  %v1847_v63 = vld [vmem:[%s4035_s7 + $0x118] sm:$0xff] }
  0x4c   : > { %875 = vmatprep.mubr.f32.mxu1 %v2963_v2 }
  0x4d   : > { %2615 = vmatmul.mubr.msk.f32.gmra.mrb[30].mxu0 %vm535_vm1, %v481_v22  ;;  %v2707_v22 = vpack.c.bf16 %v1818_v19, %v1816_v18  ;;  %v1852_v18 = vld [vmem:[%s4035_s7 + $0x140] sm:$0xff]  ;;  %v1854_v19 = vld [vmem:[%s4035_s7 + $0x150] sm:$0xff] }
  0x4e   : > { %1055 = vmatprep.mubr.f32.mxu0 %v2963_v2 }
  0x4f   : > { %2629 = vmatmul.mubr.msk.f32.gmra.mrb[26].mxu1 %vm535_vm1, %v495_v1  ;;  %v505_v1 = vld [vmem:[%s3261_s19 + $0x38] sm:$0xff] }
  0x50   : > { %881 = vmatprep.mubr.f32.mxu1 %v2963_v2  ;;  %2708 = vmatpush1.bf16.msra.mxu1 %v2707_v22  ;;  %v2743_v22 = vpack.c.bf16 %v1854_v19, %v1852_v18 }
  0x51   : > { %2632 = vmatmul.mubr.msk.f32.vlgmr.msra.gmra.mrb[0].mxu0 %vm894_vm2, %v434_v23  ;;  %v499_v23 = vld [vmem:[%s3261_s19 + $0x8] sm:$0xff] }
  0x52   : > { %2665 = vmatpush1.msk.msra.mxu0 %vm632_vm0, %v3045_v4  ;;  %1061 = vmatprep.mubr.f32.mxu0 %v2963_v2  ;;  %v496_v4 = vld [vmem:[%s3056_s29 + $0xf0] sm:$0xff] }
  0x53   : > { %2630 = vmatmul.mubr.msk.f32.gmra.mrb[28].mxu1 %vm535_vm1, %v496_v4  ;;  %v1844_v4 = vld [vmem:[%s4035_s7 + $0x100] sm:$0xff] }
  0x54   : > { %887 = vmatprep.mubr.f32.mxu1 %v2963_v2 }
  0x55   : > { %2633 = vmatmul.mubr.msk.f32.gmra.mrb[2].mxu0 %vm894_vm2, %v435_v24  ;;  %v2709_v24 = vpack.c.bf16 %v1823_v21, %v1821_v20  ;;  %v1857_v20 = vld [vmem:[%s4035_s7 + $0x168] sm:$0xff]  ;;  %v1859_v21 = vld [vmem:[%s4035_s7 + $0x178] sm:$0xff] }
  0x56   : > { %1067 = vmatprep.mubr.f32.mxu0 %v2963_v2 }
  0x57   : > { %2631 = vmatmul.mubr.msk.f32.gmra.mrb[30].mxu1 %vm535_vm1, %v497_v6  ;;  %2710 = vmatprep.subr.bf16.mxu1 %v2709_v24  ;;  %v1849_v6 = vld [vmem:[%s4035_s7 + $0x128] sm:$0xff]  ;;  %v2745_v24 = vpack.c.bf16 %v1859_v21, %v1857_v20 }
  0x59   : > { %2634 = vmatmul.mubr.msk.f32.gmra.mrb[4].mxu0 %vm894_vm2, %v436_v25  ;;  %v1820_v25 = vld [vmem:[%s4035_s7 + $0x40] sm:$0xff] }
  0x5a   : > { %1073 = vmatprep.mubr.f32.mxu0 %v2963_v2 }
  0x5d   : > { %2635 = vmatmul.mubr.msk.f32.gmra.mrb[6].mxu0 %vm894_vm2, %v437_v26  ;;  %v1822_v26 = vld [vmem:[%s4035_s7 + $0x50] sm:$0xff] }
  0x5e   : > { %1079 = vmatprep.mubr.f32.mxu0 %v2963_v2 }
  0x61   : > { %2636 = vmatmul.mubr.msk.f32.gmra.mrb[8].mxu0 %vm894_vm2, %v438_v27  ;;  %v1825_v27 = vld [vmem:[%s4035_s7 + $0x68] sm:$0xff] }
  0x62   : > { %1085 = vmatprep.mubr.f32.mxu0 %v2963_v2 }
  0x65   : > { %2637 = vmatmul.mubr.msk.f32.gmra.mrb[10].mxu0 %vm894_vm2, %v439_v28  ;;  %v1827_v28 = vld [vmem:[%s4035_s7 + $0x78] sm:$0xff] }
  0x66   : > { %1091 = vmatprep.mubr.f32.mxu0 %v2963_v2 }
  0x69   : > { %2638 = vmatmul.mubr.msk.f32.gmra.mrb[12].mxu0 %vm894_vm2, %v440_v29  ;;  %v2711_v29 = vpack.c.bf16 %v1822_v26, %v1820_v25  ;;  %v1856_v25 = vld [vmem:[%s4035_s7 + $0x160] sm:$0xff]  ;;  %v1858_v26 = vld [vmem:[%s4035_s7 + $0x170] sm:$0xff] }
  0x6a   : > { %1097 = vmatprep.mubr.f32.mxu0 %v2963_v2 }
  0x6b   : > { %2712 = vmatpush1.bf16.msra.mxu1 %v2711_v29  ;;  %v2747_v29 = vpack.c.bf16 %v1858_v26, %v1856_v25 }
  0x6d   : > { %2639 = vmatmul.mubr.msk.f32.gmra.mrb[14].mxu0 %vm894_vm2, %v441_v30  ;;  %v500_v30 = vld [vmem:[%s3261_s19 + $0x10] sm:$0xff] }
  0x6e   : > { %1103 = vmatprep.mubr.f32.mxu0 %v2963_v2 }
  0x71   : > { %2640 = vmatmul.mubr.msk.f32.gmra.mrb[16].mxu0 %vm894_vm2, %v442_v31  ;;  %v2713_v31 = vpack.c.bf16 %v1827_v28, %v1825_v27  ;;  %v1861_v27 = vld [vmem:[%s4035_s7 + $0x188] sm:$0xff]  ;;  %v1863_v28 = vld [vmem:[%s4035_s7 + $0x198] sm:$0xff] }
  0x72   : > { %1109 = vmatprep.mubr.f32.mxu0 %v2963_v2 }
  0x73   : > { %2714 = vmatprep.subr.bf16.mxu1 %v2713_v31  ;;  %v2749_v31 = vpack.c.bf16 %v1863_v28, %v1861_v27 }
  0x75   : > { %2641 = vmatmul.mubr.msk.f32.gmra.mrb[18].mxu0 %vm894_vm2, %v443_v32  ;;  %v1824_v32 = vld [vmem:[%s4035_s7 + $0x60] sm:$0xff] }
  0x76   : > { %1115 = vmatprep.mubr.f32.mxu0 %v2963_v2 }
  0x79   : > { %2642 = vmatmul.mubr.msk.f32.gmra.mrb[20].mxu0 %vm894_vm2, %v444_v33  ;;  %v1826_v33 = vld [vmem:[%s4035_s7 + $0x70] sm:$0xff] }
  0x7a   : > { %1121 = vmatprep.mubr.f32.mxu0 %v2963_v2 }
  0x7d   : > { %2643 = vmatmul.mubr.msk.f32.gmra.mrb[22].mxu0 %vm894_vm2, %v445_v34  ;;  %v1829_v34 = vld [vmem:[%s4035_s7 + $0x88] sm:$0xff] }
  0x7e   : > { %1127 = vmatprep.mubr.f32.mxu0 %v2963_v2 }
  0x81   : > { %2644 = vmatmul.mubr.msk.f32.gmra.mrb[24].mxu0 %vm894_vm2, %v446_v35  ;;  %v1831_v35 = vld [vmem:[%s4035_s7 + $0x98] sm:$0xff] }
  0x82   : > { %1133 = vmatprep.mubr.f32.mxu0 %v2963_v2 }
  0x85   : > { %2645 = vmatmul.mubr.msk.f32.gmra.mrb[26].mxu0 %vm894_vm2, %v447_v36  ;;  %v2715_v36 = vpack.c.bf16 %v1826_v33, %v1824_v32  ;;  %v1860_v32 = vld [vmem:[%s4035_s7 + $0x180] sm:$0xff]  ;;  %v1862_v33 = vld [vmem:[%s4035_s7 + $0x190] sm:$0xff] }
  0x86   : > { %1139 = vmatprep.mubr.f32.mxu0 %v2963_v2 }
  0x87   : > { %2716 = vmatpush1.bf16.msra.mxu1 %v2715_v36  ;;  %v2751_v36 = vpack.c.bf16 %v1862_v33, %v1860_v32 }
  0x89   : > { %2646 = vmatmul.mubr.msk.f32.gmra.mrb[28].mxu0 %vm894_vm2, %v448_v37  ;;  %v501_v37 = vld [vmem:[%s3261_s19 + $0x18] sm:$0xff] }
  0x8a   : > { %1145 = vmatprep.mubr.f32.mxu0 %v2963_v2 }
  0x8d   : > { %2647 = vmatmul.mubr.msk.f32.gmra.mrb[30].mxu0 %vm894_vm2, %v449_v38  ;;  %v2717_v38 = vpack.c.bf16 %v1831_v35, %v1829_v34  ;;  %v1865_v34 = vld [vmem:[%s4035_s7 + $0x1a8] sm:$0xff]  ;;  %v1867_v35 = vld [vmem:[%s4035_s7 + $0x1b8] sm:$0xff] }
  0x8e   : > { %1151 = vmatprep.mubr.f32.mxu0 %v2963_v2 }
  0x8f   : > { %2718 = vmatprep.subr.bf16.mxu1 %v2717_v38  ;;  %v2753_v38 = vpack.c.bf16 %v1867_v35, %v1865_v34 }
  0x91   : > { %2648 = vmatmul.mubr.msk.f32.gmra.mrb[32].mxu0 %vm894_vm2, %v450_v40  ;;  %v1830_v40 = vld [vmem:[%s4035_s7 + $0x90] sm:$0xff] }
  0x92   : > { %1157 = vmatprep.mubr.f32.mxu0 %v2963_v2  ;;  %v2719_v43 = vpack.c.bf16 %v1830_v40, %v1828_v39  ;;  %v1864_v39 = vld [vmem:[%s4035_s7 + $0x1a0] sm:$0xff]  ;;  %v1866_v40 = vld [vmem:[%s4035_s7 + $0x1b0] sm:$0xff] }
  0x94   : > { %2720 = vmatpush1.bf16.msra.mxu1 %v2719_v43  ;;  %v2755_v43 = vpack.c.bf16 %v1866_v40, %v1864_v39 }
  0x95   : > { %2649 = vmatmul.mubr.msk.f32.gmra.mrb[34].mxu0 %vm894_vm2, %v451_v42  ;;  %v1835_v42 = vld [vmem:[%s4035_s7 + $0xb8] sm:$0xff] }
  0x96   : > { %1163 = vmatprep.mubr.f32.mxu0 %v2963_v2  ;;  %v2721_v45 = vpack.c.bf16 %v1835_v42, %v1833_v41  ;;  %v1869_v41 = vld [vmem:[%s4035_s7 + $0x1c8] sm:$0xff]  ;;  %v1871_v42 = vld [vmem:[%s4035_s7 + $0x1d8] sm:$0xff] }
  0x98   : > { %2722 = vmatprep.subr.bf16.mxu1 %v2721_v45  ;;  %v2757_v45 = vpack.c.bf16 %v1871_v42, %v1869_v41 }
  0x99   : > { %2650 = vmatmul.mubr.msk.f32.gmra.mrb[36].mxu0 %vm894_vm2, %v452_v44  ;;  %v502_v44 = vld [vmem:[%s3261_s19 + $0x20] sm:$0xff] }
  0x9a   : > { %1169 = vmatprep.mubr.f32.mxu0 %v2963_v2 }
  0x9d   : > { %2651 = vmatmul.mubr.msk.f32.gmra.mrb[38].mxu0 %vm894_vm2, %v453_v46  ;;  %v1832_v46 = vld [vmem:[%s4035_s7 + $0xa0] sm:$0xff] }
  0x9e   : > { %1175 = vmatprep.mubr.f32.mxu0 %v2963_v2 }
  0xa1   : > { %2652 = vmatmul.mubr.msk.f32.gmra.mrb[40].mxu0 %vm894_vm2, %v454_v48  ;;  %v1837_v48 = vld [vmem:[%s4035_s7 + $0xc8] sm:$0xff] }
  0xa2   : > { %1181 = vmatprep.mubr.f32.mxu0 %v2963_v2 }
  0xa5   : > { %2653 = vmatmul.mubr.msk.f32.gmra.mrb[42].mxu0 %vm894_vm2, %v455_v50  ;;  %v2723_v50 = vpack.c.bf16 %v1834_v47, %v1832_v46  ;;  %v512_v46 = vld [vmem:[%s3261_s19 + $0x70] sm:$0xff]  ;;  %v513_v47 = vld [vmem:[%s3261_s19 + $0x78] sm:$0xff] }
  0xa6   : > { %1187 = vmatprep.mubr.f32.mxu0 %v2963_v2 }
  0xa7   : > { %2724 = vmatpush1.bf16.msra.mxu1 %v2723_v50  ;;  %v516_v50 = vld [vmem:[%s3261_s19 + $0x90] sm:$0xff] }
  0xa9   : > { %2654 = vmatmul.mubr.msk.f32.gmra.mrb[44].mxu0 %vm894_vm2, %v456_v52  ;;  %v2725_v52 = vpack.c.bf16 %v1839_v49, %v1837_v48  ;;  %v514_v48 = vld [vmem:[%s3261_s19 + $0x80] sm:$0xff]  ;;  %v515_v49 = vld [vmem:[%s3261_s19 + $0x88] sm:$0xff] }
  0xaa   : > { %1193 = vmatprep.mubr.f32.mxu0 %v2963_v2 }
  0xab   : > { %2726 = vmatprep.subr.bf16.mxu1 %v2725_v52  ;;  %v518_v52 = vld [vmem:[%s3261_s19 + $0xa0] sm:$0xff] }
  0xad   : > { %2655 = vmatmul.mubr.msk.f32.gmra.mrb[46].mxu0 %vm894_vm2, %v457_v54  ;;  %v1838_v54 = vld [vmem:[%s4035_s7 + $0xd0] sm:$0xff] }
  0xae   : > { %1199 = vmatprep.mubr.f32.mxu0 %v2963_v2  ;;  %v2727_v57 = vpack.c.bf16 %v1838_v54, %v1836_v53  ;;  %v1868_v53 = vld [vmem:[%s4035_s7 + $0x1c0] sm:$0xff]  ;;  %v1870_v54 = vld [vmem:[%s4035_s7 + $0x1d0] sm:$0xff] }
  0xb0   : > { %2728 = vmatpush1.bf16.msra.mxu1 %v2727_v57  ;;  %v1873_v57 = vld [vmem:[%s4035_s7 + $0x1e8] sm:$0xff] }
  0xb1   : > { %2656 = vmatmul.mubr.msk.f32.gmra.mrb[48].mxu0 %vm894_vm2, %v458_v56  ;;  %v1843_v56 = vld [vmem:[%s4035_s7 + $0xf8] sm:$0xff] }
  0xb2   : > { %1205 = vmatprep.mubr.f32.mxu0 %v2963_v2  ;;  %v2729_v59 = vpack.c.bf16 %v1843_v56, %v1841_v55  ;;  %v519_v55 = vld [vmem:[%s3261_s19 + $0xa8] sm:$0xff]  ;;  %v2759_v56 = vpack.c.bf16 %v1870_v54, %v1868_v53 }
  0xb3   : > { %v2210_v53 = vld [vmem:[%s4037_s9 + $0x8] sm:$0xff] }
  0xb4   : > { %2730 = vmatprep.subr.bf16.mxu1 %v2729_v59 }
  0xb5   : > { %2657 = vmatmul.mubr.msk.f32.gmra.mrb[50].mxu0 %vm894_vm2, %v459_v58  ;;  %v504_v58 = vld [vmem:[%s3261_s19 + $0x30] sm:$0xff] }
  0xb6   : > { %1211 = vmatprep.mubr.f32.mxu0 %v2963_v2 }
  0xb9   : > { %2658 = vmatmul.mubr.msk.f32.gmra.mrb[52].mxu0 %vm894_vm2, %v460_v60  ;;  %v1840_v60 = vld [vmem:[%s4035_s7 + $0xe0] sm:$0xff] }
  0xba   : > { %1217 = vmatprep.mubr.f32.mxu0 %v2963_v2 }
  0xbd   : > { %2659 = vmatmul.mubr.msk.f32.gmra.mrb[54].mxu0 %vm894_vm2, %v461_v62  ;;  %v1845_v62 = vld [vmem:[%s4035_s7 + $0x108] sm:$0xff] }
  0xbe   : > { %1223 = vmatprep.mubr.f32.mxu0 %v2963_v2 }
  0xc1   : > { %2660 = vmatmul.mubr.msk.f32.gmra.mrb[56].mxu0 %vm894_vm2, %v462_v0  ;;  %v2731_v0 = vpack.c.bf16 %v1842_v61, %v1840_v60  ;;  %v1872_v60 = vld [vmem:[%s4035_s7 + $0x1e0] sm:$0xff]  ;;  %v1874_v61 = vld [vmem:[%s4035_s7 + $0x1f0] sm:$0xff] }
  0xc2   : > { %1229 = vmatprep.mubr.f32.mxu0 %v2963_v2 }
  0xc3   : > { %2732 = vmatpush1.bf16.msra.mxu1 %v2731_v0  ;;  %v521_v0 = vld [vmem:[%s3261_s19 + $0xb8] sm:$0xff] }
  0xc5   : > { %2661 = vmatmul.mubr.msk.f32.gmra.mrb[58].mxu0 %vm894_vm2, %v463_v3  ;;  %v2733_v3 = vpack.c.bf16 %v1847_v63, %v1845_v62  ;;  %v520_v62 = vld [vmem:[%s3261_s19 + $0xb0] sm:$0xff]  ;;  %v2763_v63 = vpack.c.bf16 %v1874_v61, %v1872_v60 }
  0xc6   : > { %1235 = vmatprep.mubr.f32.mxu0 %v2963_v2  ;;  %v2211_v61 = vld [vmem:[%s4037_s9 + $0x10] sm:$0xff] }
  0xc7   : > { %2734 = vmatprep.subr.bf16.mxu1 %v2733_v3  ;;  %v523_v3 = vld [vmem:[%s3261_s19 + $0xc8] sm:$0xff] }
  0xc9   : > { %2662 = vmatmul.mubr.msk.f32.gmra.mrb[60].mxu0 %vm894_vm2, %v464_v5  ;;  %v1846_v5 = vld [vmem:[%s4035_s7 + $0x110] sm:$0xff] }
  0xca   : > { %1241 = vmatprep.mubr.f32.mxu0 %v2963_v2 }
  0xcd   : > { %2663 = vmatmul.mubr.msk.f32.gmra.mrb[62].mxu0 %vm894_vm2, %v465_v7  ;;  %v1851_v7 = vld [vmem:[%s4035_s7 + $0x138] sm:$0xff] }
  0xce   : > { %1415 = vmatprep.mubr.f32.mxu0 %v2963_v2  ;;  %v2737_v10 = vpack.c.bf16 %v1851_v7, %v1849_v6  ;;  %v526_v6 = vld [vmem:[%s3261_s19 + $0xe0] sm:$0xff]  ;;  %v527_v7 = vld [vmem:[%s3261_s19 + $0xe8] sm:$0xff] }
  0xd1   : > { %2666 = vmatmul.mubr.msk.f32.vlgmr.msra.gmra.mrb[0].mxu0 %vm535_vm1, %v498_v8  ;;  %v2735_v8 = vpack.c.bf16 %v1846_v5, %v1844_v4  ;;  %v524_v4 = vld [vmem:[%s3261_s19 + $0xd0] sm:$0xff]  ;;  %v525_v5 = vld [vmem:[%s3261_s19 + $0xd8] sm:$0xff] }
  0xd2   : > { %1421 = vmatprep.mubr.f32.mxu0 %v2963_v2 }
  0xd3   : > { %2736 = vmatpush1.bf16.msra.mxu1 %v2735_v8  ;;  %v528_v8 = vld [vmem:[%s3261_s19 + $0xf0] sm:$0xff] }
  0xd4   : > { %2738 = vmatprep.subr.bf16.mxu1 %v2737_v10 }
  0xd5   : > { %2667 = vmatmul.mubr.msk.f32.gmra.mrb[2].mxu0 %vm535_vm1, %v499_v23  ;;  %v508_v23 = vld [vmem:[%s3261_s19 + $0x50] sm:$0xff] }
  0xd6   : > { %1427 = vmatprep.mubr.f32.mxu0 %v2963_v2 }
  0xd7   : > { %2740 = vmatpush1.bf16.msra.mxu1 %v2739_v15 }
  0xd8   : > { %2742 = vmatprep.subr.bf16.mxu1 %v2741_v17 }
  0xd9   : > { %2668 = vmatmul.mubr.msk.f32.gmra.mrb[4].mxu0 %vm535_vm1, %v500_v30  ;;  %v509_v30 = vld [vmem:[%s3261_s19 + $0x58] sm:$0xff] }
  0xda   : > { %1433 = vmatprep.mubr.f32.mxu0 %v2963_v2 }
  0xdb   : > { %2744 = vmatpush1.bf16.msra.mxu1 %v2743_v22 }
  0xdc   : > { %2746 = vmatprep.subr.bf16.mxu1 %v2745_v24 }
  0xdd   : > { %2669 = vmatmul.mubr.msk.f32.gmra.mrb[6].mxu0 %vm535_vm1, %v501_v37  ;;  %v510_v37 = vld [vmem:[%s3261_s19 + $0x60] sm:$0xff] }
  0xde   : > { %1439 = vmatprep.mubr.f32.mxu0 %v2963_v2 }
  0xdf   : > { %2748 = vmatpush1.bf16.msra.mxu1 %v2747_v29  ;;  %v2964_v29 = vmov 0.0|0.0  }
  0xe0   : > { %2750 = vmatprep.subr.bf16.mxu1 %v2749_v31 }
  0xe1   : > { %2670 = vmatmul.mubr.msk.f32.gmra.mrb[8].mxu0 %vm535_vm1, %v502_v44  ;;  %v511_v44 = vld [vmem:[%s3261_s19 + $0x68] sm:$0xff] }
  0xe2   : > { %1445 = vmatprep.mubr.f32.mxu0 %v2963_v2 }
  0xe3   : > { %2752 = vmatpush1.bf16.msra.mxu1 %v2751_v36  ;;  %v1674_v36 = vlaneseq }
  0xe4   : > { %2754 = vmatprep.subr.bf16.mxu1 %v2753_v38 }
  0xe5   : > { %2671 = vmatmul.mubr.msk.f32.gmra.mrb[10].mxu0 %vm535_vm1, %v503_v51  ;;  %v517_v51 = vld [vmem:[%s3261_s19 + $0x98] sm:$0xff]  ;;  %v3613_v39 = vshrl.u32 %v1674_v36, 7 }
  0xe6   : > { %1451 = vmatprep.mubr.f32.mxu0 %v2963_v2 }
  0xe7   : > { %2756 = vmatpush1.bf16.msra.mxu1 %v2755_v43  ;;  %v1676_v42 = vsub.s32 0, %v3613_v39  ;;  %v1672_v43 = vld [vmem:[%s4034_s6] sm:$0x3] }
  0xe8   : > { %2758 = vmatprep.subr.bf16.mxu1 %v2757_v45 }
  0xe9   : > { %2672 = vmatmul.mubr.msk.f32.gmra.mrb[12].mxu0 %vm535_vm1, %v504_v58  ;;  %v1875_v58 = vld [vmem:[%s4035_s7 + $0x1f8] sm:$0xff] }
  0xea   : > { %1457 = vmatprep.mubr.f32.mxu0 %v2963_v2  ;;  %v2761_v59 = vpack.c.bf16 %v1875_v58, %v1873_v57 }
  0xeb   : > { %2760 = vmatpush1.bf16.msra.mxu1 %v2759_v56 }
  0xec   : > { %2762 = vmatprep.subr.bf16.mxu1 %v2761_v59 }
  0xed   : > { %2673 = vmatmul.mubr.msk.f32.gmra.mrb[14].mxu0 %vm535_vm1, %v505_v1  ;;  %v522_v1 = vld [vmem:[%s3261_s19 + $0xc0] sm:$0xff] }
  0xee   : > { %1463 = vmatprep.mubr.f32.mxu0 %v2963_v2  ;;  %v3556_v10 = vpop.f32.mrb[0].mxu1 }
  0xef   : > { %2764 = vmatpush1.bf16.msra.mxu1 %v2763_v63  ;;  %v3558_v11 = vpop.f32.mrb[1].mxu1 }
  0xf0   : > { %2765 = vmatprep.subr.bf16.mxu1 %v2964_v29 }
  0xf1   : > { %2674 = vmatmul.mubr.msk.f32.gmra.mrb[16].mxu0 %vm535_vm1, %v506_v9  ;;  %v529_v9 = vld [vmem:[%s3261_s19 + $0xf8] sm:$0xff] }
  0xf2   : > { %1469 = vmatprep.mubr.f32.mxu0 %v2963_v2  ;;  %v3560_v12 = vpop.f32.mrb[2].mxu1 }
  0xf3   : > { %v3562_v13 = vpop.f32.mrb[3].mxu1 }
  0xf5   : > { %2675 = vmatmul.mubr.msk.f32.gmra.mrb[18].mxu0 %vm535_vm1, %v507_v16 }
  0xf6   : > { %1475 = vmatprep.mubr.f32.mxu0 %v2963_v2  ;;  %v3564_v14 = vpop.f32.mrb[4].mxu1 }
  0xf7   : > { %v3566_v15 = vpop.f32.mrb[5].mxu1 }
  0xf9   : > { %2676 = vmatmul.mubr.msk.f32.gmra.mrb[20].mxu0 %vm535_vm1, %v508_v23 }
  0xfa   : > { %1481 = vmatprep.mubr.f32.mxu0 %v2963_v2  ;;  %v3568_v16 = vpop.f32.mrb[6].mxu1 }
  0xfb   : > { %v3570_v17 = vpop.f32.mrb[7].mxu1 }
  0xfd   : > { %2677 = vmatmul.mubr.msk.f32.gmra.mrb[22].mxu0 %vm535_vm1, %v509_v30 }
  0xfe   : > { %1487 = vmatprep.mubr.f32.mxu0 %v2963_v2 }
 0x101   : > { %2678 = vmatmul.mubr.msk.f32.gmra.mrb[24].mxu0 %vm535_vm1, %v510_v37 }
 0x102   : > { %1493 = vmatprep.mubr.f32.mxu0 %v2963_v2 }
 0x105   : > { %2679 = vmatmul.mubr.msk.f32.gmra.mrb[26].mxu0 %vm535_vm1, %v511_v44  ;;  %v1680_v44 = vsub.s32 1, %v3613_v39 }
 0x106   : > { %1499 = vmatprep.mubr.f32.mxu0 %v2963_v2 }
 0x109   : > { %2680 = vmatmul.mubr.msk.f32.gmra.mrb[28].mxu0 %vm535_vm1, %v512_v46 }
 0x10a   : > { %1505 = vmatprep.mubr.f32.mxu0 %v2963_v2 }
 0x10d   : > { %2681 = vmatmul.mubr.msk.f32.gmra.mrb[30].mxu0 %vm535_vm1, %v513_v47  ;;  %v3630_v47 = vrot.slane %v1672_v43, %v1676_v42 }
 0x10e   : > { %1511 = vmatprep.mubr.f32.mxu0 %v2963_v2 }
 0x111   : > { %2682 = vmatmul.mubr.msk.f32.gmra.mrb[32].mxu0 %vm535_vm1, %v514_v48  ;;  %v3634_v48 = vrot.slane %v1672_v43, %v1680_v44 }
 0x112   : > { %1517 = vmatprep.mubr.f32.mxu0 %v2963_v2 }
 0x115   : > { %2683 = vmatmul.mubr.msk.f32.gmra.mrb[34].mxu0 %vm535_vm1, %v515_v49 }
 0x116   : > { %1523 = vmatprep.mubr.f32.mxu0 %v2963_v2 }
 0x119   : > { %2684 = vmatmul.mubr.msk.f32.gmra.mrb[36].mxu0 %vm535_vm1, %v516_v50 }
 0x11a   : > { %1529 = vmatprep.mubr.f32.mxu0 %v2963_v2 }
 0x11d   : > { %2685 = vmatmul.mubr.msk.f32.gmra.mrb[38].mxu0 %vm535_vm1, %v517_v51 }
 0x11e   : > { %1535 = vmatprep.mubr.f32.mxu0 %v2963_v2 }
 0x121   : > { %2686 = vmatmul.mubr.msk.f32.gmra.mrb[40].mxu0 %vm535_vm1, %v518_v52  ;;  %v2209_v52 = vld [vmem:[%s4037_s9] sm:$0xff] }
 0x122   : > { %1541 = vmatprep.mubr.f32.mxu0 %v2963_v2  ;;  %v2766_v57 = vpack.c.bf16 %v2210_v53, %v2209_v52  ;;  %v2215_v53 = vld [vmem:[%s4037_s9 + $0x30] sm:$0xff] }
 0x125   : > { %2687 = vmatmul.mubr.msk.f32.gmra.mrb[42].mxu0 %vm535_vm1, %v519_v55 }
 0x126   : > { %1547 = vmatprep.mubr.f32.mxu0 %v2963_v2 }
 0x129   : > { %2688 = vmatmul.mubr.msk.f32.gmra.mrb[44].mxu0 %vm535_vm1, %v520_v62  ;;  %v2212_v62 = vld [vmem:[%s4037_s9 + $0x18] sm:$0xff] }
 0x12a   : > { %1553 = vmatprep.mubr.f32.mxu0 %v2963_v2 }
 0x12d   : > { %2689 = vmatmul.mubr.msk.f32.gmra.mrb[46].mxu0 %vm535_vm1, %v521_v0 }
 0x12e   : > { %1559 = vmatprep.mubr.f32.mxu0 %v2963_v2 }
 0x131   : > { %2690 = vmatmul.mubr.msk.f32.gmra.mrb[48].mxu0 %vm535_vm1, %v522_v1 }
 0x132   : > { %1565 = vmatprep.mubr.f32.mxu0 %v2963_v2 }
 0x135   : > { %2691 = vmatmul.mubr.msk.f32.gmra.mrb[50].mxu0 %vm535_vm1, %v523_v3  ;;  %v2769_v3 = vpack.c.bf16 %v2212_v62, %v2211_v61  ;;  %v2217_v62 = vld [vmem:[%s4037_s9 + $0x40] sm:$0xff] }
 0x136   : > { %1571 = vmatprep.mubr.f32.mxu0 %v2963_v2 }
 0x139   : > { %2692 = vmatmul.mubr.msk.f32.gmra.mrb[52].mxu0 %vm535_vm1, %v524_v4 }
 0x13a   : > { %1577 = vmatprep.mubr.f32.mxu0 %v2963_v2 }
 0x13d   : > { %2693 = vmatmul.mubr.msk.f32.gmra.mrb[54].mxu0 %vm535_vm1, %v525_v5 }
 0x13e   : > { %1583 = vmatprep.mubr.f32.mxu0 %v2963_v2 }
 0x141   : > { %2694 = vmatmul.mubr.msk.f32.gmra.mrb[56].mxu0 %vm535_vm1, %v526_v6 }
 0x142   : > { %1589 = vmatprep.mubr.f32.mxu0 %v2963_v2 }
 0x145   : > { %2695 = vmatmul.mubr.msk.f32.gmra.mrb[58].mxu0 %vm535_vm1, %v527_v7  ;;  %v2213_v7 = vld [vmem:[%s4037_s9 + $0x20] sm:$0xff] }
 0x146   : > { %1595 = vmatprep.mubr.f32.mxu0 %v2963_v2 }
 0x149   : > { %2696 = vmatmul.mubr.msk.f32.gmra.mrb[60].mxu0 %vm535_vm1, %v528_v8  ;;  %v2214_v8 = vld [vmem:[%s4037_s9 + $0x28] sm:$0xff] }
 0x14a   : > { %1601 = vmatprep.mubr.f32.mxu0 %v2963_v2  ;;  %v3572_v2 = vpop.f32.mrb[8].mxu1 }
 0x14b   : > { %v3574_v18 = vpop.f32.mrb[9].mxu1 }
 0x14c   : > { %v3576_v19 = vpop.f32.mrb[10].mxu1 }
 0x14d   : > { %2697 = vmatmul.mubr.msk.f32.gmra.mrb[62].mxu0 %vm535_vm1, %v529_v9  ;;  %v3578_v20 = vpop.f32.mrb[11].mxu1 }
 0x14e   : > { %v3580_v21 = vpop.f32.mrb[12].mxu1 }
 0x14f   : > { %v3582_v22 = vpop.f32.mrb[13].mxu1 }
 0x150   : > { %v3584_v23 = vpop.f32.mrb[14].mxu1 }
 0x151   : > { %v3586_v24 = vpop.f32.mrb[15].mxu1 }
 0x152   : > { %v3588_v25 = vpop.f32.mrb[16].mxu1 }
 0x153   : > { %v3590_v26 = vpop.f32.mrb[17].mxu1 }
 0x154   : > { %v3592_v27 = vpop.f32.mrb[18].mxu1 }
 0x155   : > { %v3594_v28 = vpop.f32.mrb[19].mxu1 }
 0x156   : > { %v3597_v30 = vpop.f32.mrb[20].mxu1 }
 0x157   : > { %v3599_v31 = vpop.f32.mrb[21].mxu1 }
 0x158   : > { %v3601_v32 = vpop.f32.mrb[22].mxu1 }
 0x159   : > { %v3603_v33 = vpop.f32.mrb[23].mxu1 }
 0x15a   : > { %v3605_v34 = vpop.f32.mrb[24].mxu1 }
 0x15b   : > { %v3607_v35 = vpop.f32.mrb[25].mxu1 }
 0x15c   : > { %v3609_v37 = vpop.f32.mrb[26].mxu1 }
 0x15d   : > { %v3611_v38 = vpop.f32.mrb[27].mxu1 }
 0x15e   : > { %v3615_v40 = vpop.f32.mrb[28].mxu1 }
 0x15f   : > { %v3617_v41 = vpop.f32.mrb[29].mxu1 }
 0x160   : > { %v3624_v45 = vpop.f32.mrb[30].mxu1 }
 0x161   : > { %v3626_v46 = vpop.f32.mrb[31].mxu1 }
 0x1a4   : > { %v1417_v49 = vpop.f32.mrb[0].mxu0 }
 0x1a5   : > { %v1684_v50 = vadd.f32 %v3630_v47, %v1417_v49  ;;  %v1419_v51 = vpop.f32.mrb[1].mxu0  ;;  %v2772_v49 = vpack.c.bf16 %v2214_v8, %v2213_v7  ;;  %v2219_v8 = vld [vmem:[%s4037_s9 + $0x50] sm:$0xff] }
 0x1a6   : > { %v1685_v54 = vadd.f32 %v3634_v48, %v1419_v51 }
 0x1a7   : > { %v1748_v58 = vmax.f32 %v1684_v50, 0.0 }
 0x1a8   : > { %v1749_v55 = vmax.f32 %v1685_v54, 0.0  ;;  %v1423_v56 = vpop.f32.mrb[2].mxu0  ;;  %v2216_v54 = vld [vmem:[%s4037_s9 + $0x38] sm:$0xff] }
 0x1a9   : > { %v1686_v59 = vadd.f32 %v3630_v47, %v1423_v56  ;;  %v1425_v60 = vpop.f32.mrb[3].mxu0 }
 0x1aa   : > { %v1687_v63 = vadd.f32 %v3634_v48, %v1425_v60  ;;  %1952 = vmatprep.mubr.f32.mxu1 %v1749_v55 }
 0x1ab   : > { %1953 = vmatmul.mubr.f32.vlgmr.msra.gmra.mrb[32].mxu1 %v1748_v58  ;;  %v1750_v4 = vmax.f32 %v1686_v59, 0.0  ;;  %v2775_v58 = vpack.c.bf16 %v2216_v54, %v2215_v53  ;;  %v2221_v54 = vld [vmem:[%s4037_s9 + $0x60] sm:$0xff] }
 0x1ac   : > { %v1751_v0 = vmax.f32 %v1687_v63, 0.0  ;;  %v1429_v1 = vpop.f32.mrb[4].mxu0  ;;  %2767 = vmatpush1.bf16.msra.mxu1 %v2766_v57  ;;  %v2218_v63 = vld [vmem:[%s4037_s9 + $0x48] sm:$0xff] }
 0x1ad   : > { %v1688_v5 = vadd.f32 %v3630_v47, %v1429_v1  ;;  %v1431_v6 = vpop.f32.mrb[5].mxu0  ;;  %2768 = vmatprep.subr.bf16.mxu1 %v2964_v29 }
 0x1ae   : > { %v1689_v9 = vadd.f32 %v3634_v48, %v1431_v6  ;;  %1958 = vmatprep.mubr.f32.mxu1 %v1751_v0 }
 0x1af   : > { %1959 = vmatmul.mubr.f32.gmra.mrb[34].mxu1 %v1750_v4  ;;  %v1752_v50 = vmax.f32 %v1688_v5, 0.0  ;;  %v2778_v4 = vpack.c.bf16 %v2218_v63, %v2217_v62  ;;  %v2223_v63 = vld [vmem:[%s4037_s9 + $0x70] sm:$0xff] }
 0x1b0   : > { %v1753_v36 = vmax.f32 %v1689_v9, 0.0  ;;  %v1435_v43 = vpop.f32.mrb[6].mxu0  ;;  %2770 = vmatpush1.bf16.msra.mxu1 %v2769_v3  ;;  %v2220_v9 = vld [vmem:[%s4037_s9 + $0x58] sm:$0xff] }
 0x1b1   : > { %v1690_v51 = vadd.f32 %v3630_v47, %v1435_v43  ;;  %v1437_v52 = vpop.f32.mrb[7].mxu0  ;;  %2771 = vmatprep.subr.bf16.mxu1 %v2964_v29 }
 0x1b2   : > { %v1691_v55 = vadd.f32 %v3634_v48, %v1437_v52  ;;  %1964 = vmatprep.mubr.f32.mxu1 %v1753_v36 }
 0x1b3   : > { %1965 = vmatmul.mubr.f32.gmra.mrb[36].mxu1 %v1752_v50  ;;  %v1754_v59 = vmax.f32 %v1690_v51, 0.0  ;;  %v2781_v50 = vpack.c.bf16 %v2220_v9, %v2219_v8  ;;  %v2225_v9 = vld [vmem:[%s4037_s9 + $0x80] sm:$0xff] }
 0x1b4   : > { %v1755_v56 = vmax.f32 %v1691_v55, 0.0  ;;  %v1441_v57 = vpop.f32.mrb[8].mxu0  ;;  %2773 = vmatpush1.bf16.msra.mxu1 %v2772_v49  ;;  %v2222_v55 = vld [vmem:[%s4037_s9 + $0x68] sm:$0xff] }
 0x1b5   : > { %v1692_v60 = vadd.f32 %v3630_v47, %v1441_v57  ;;  %v1443_v61 = vpop.f32.mrb[9].mxu0  ;;  %2774 = vmatprep.subr.bf16.mxu1 %v2964_v29 }
 0x1b6   : > { %v1693_v0 = vadd.f32 %v3634_v48, %v1443_v61  ;;  %1970 = vmatprep.mubr.f32.mxu1 %v1755_v56 }
 0x1b7   : > { %1971 = vmatmul.mubr.f32.gmra.mrb[38].mxu1 %v1754_v59  ;;  %v1756_v5 = vmax.f32 %v1692_v60, 0.0  ;;  %v2784_v59 = vpack.c.bf16 %v2222_v55, %v2221_v54  ;;  %v2227_v55 = vld [vmem:[%s4037_s9 + $0x90] sm:$0xff] }
 0x1b8   : > { %v1757_v1 = vmax.f32 %v1693_v0, 0.0  ;;  %v1447_v3 = vpop.f32.mrb[10].mxu0  ;;  %2776 = vmatpush1.bf16.msra.mxu1 %v2775_v58  ;;  %v2224_v0 = vld [vmem:[%s4037_s9 + $0x78] sm:$0xff] }
 0x1b9   : > { %v1694_v6 = vadd.f32 %v3630_v47, %v1447_v3  ;;  %v1449_v7 = vpop.f32.mrb[11].mxu0  ;;  %2777 = vmatprep.subr.bf16.mxu1 %v2964_v29 }
 0x1ba   : > { %v1695_v36 = vadd.f32 %v3634_v48, %v1449_v7  ;;  %1976 = vmatprep.mubr.f32.mxu1 %v1757_v1 }
 0x1bb   : > { %1977 = vmatmul.mubr.f32.gmra.mrb[40].mxu1 %v1756_v5  ;;  %v1758_v51 = vmax.f32 %v1694_v6, 0.0  ;;  %v2787_v5 = vpack.c.bf16 %v2224_v0, %v2223_v63  ;;  %v2229_v0 = vld [vmem:[%s4037_s9 + $0xa0] sm:$0xff] }
 0x1bc   : > { %v1759_v43 = vmax.f32 %v1695_v36, 0.0  ;;  %v1453_v49 = vpop.f32.mrb[12].mxu0  ;;  %2779 = vmatpush1.bf16.msra.mxu1 %v2778_v4  ;;  %v2226_v36 = vld [vmem:[%s4037_s9 + $0x88] sm:$0xff] }
 0x1bd   : > { %v1696_v52 = vadd.f32 %v3630_v47, %v1453_v49  ;;  %v1455_v53 = vpop.f32.mrb[13].mxu0  ;;  %2780 = vmatprep.subr.bf16.mxu1 %v2964_v29 }
 0x1be   : > { %v1697_v56 = vadd.f32 %v3634_v48, %v1455_v53  ;;  %1982 = vmatprep.mubr.f32.mxu1 %v1759_v43 }
 0x1bf   : > { %1983 = vmatmul.mubr.f32.gmra.mrb[42].mxu1 %v1758_v51  ;;  %v1760_v60 = vmax.f32 %v1696_v52, 0.0  ;;  %v2790_v51 = vpack.c.bf16 %v2226_v36, %v2225_v9  ;;  %v2231_v36 = vld [vmem:[%s4037_s9 + $0xb0] sm:$0xff] }
 0x1c0   : > { %v1761_v57 = vmax.f32 %v1697_v56, 0.0  ;;  %v1459_v58 = vpop.f32.mrb[14].mxu0  ;;  %2782 = vmatpush1.bf16.msra.mxu1 %v2781_v50  ;;  %v2228_v56 = vld [vmem:[%s4037_s9 + $0x98] sm:$0xff] }
 0x1c1   : > { %v1698_v61 = vadd.f32 %v3630_v47, %v1459_v58  ;;  %v1461_v62 = vpop.f32.mrb[15].mxu0  ;;  %2783 = vmatprep.subr.bf16.mxu1 %v2964_v29 }
 0x1c2   : > { %v1699_v1 = vadd.f32 %v3634_v48, %v1461_v62  ;;  %1988 = vmatprep.mubr.f32.mxu1 %v1761_v57 }
 0x1c3   : > { %1989 = vmatmul.mubr.f32.gmra.mrb[44].mxu1 %v1760_v60  ;;  %v1762_v6 = vmax.f32 %v1698_v61, 0.0  ;;  %v2793_v60 = vpack.c.bf16 %v2228_v56, %v2227_v55  ;;  %v2233_v56 = vld [vmem:[%s4037_s9 + $0xc0] sm:$0xff] }
 0x1c4   : > { %v1763_v3 = vmax.f32 %v1699_v1, 0.0  ;;  %v1465_v4 = vpop.f32.mrb[16].mxu0  ;;  %2785 = vmatpush1.bf16.msra.mxu1 %v2784_v59  ;;  %v2230_v1 = vld [vmem:[%s4037_s9 + $0xa8] sm:$0xff] }
 0x1c5   : > { %v1700_v7 = vadd.f32 %v3630_v47, %v1465_v4  ;;  %v1467_v8 = vpop.f32.mrb[17].mxu0  ;;  %2786 = vmatprep.subr.bf16.mxu1 %v2964_v29 }
 0x1c6   : > { %v1701_v43 = vadd.f32 %v3634_v48, %v1467_v8  ;;  %1994 = vmatprep.mubr.f32.mxu1 %v1763_v3 }
 0x1c7   : > { %1995 = vmatmul.mubr.f32.gmra.mrb[46].mxu1 %v1762_v6  ;;  %v1764_v52 = vmax.f32 %v1700_v7, 0.0  ;;  %v2796_v6 = vpack.c.bf16 %v2230_v1, %v2229_v0  ;;  %v2235_v1 = vld [vmem:[%s4037_s9 + $0xd0] sm:$0xff] }
 0x1c8   : > { %v1765_v49 = vmax.f32 %v1701_v43, 0.0  ;;  %v1471_v50 = vpop.f32.mrb[18].mxu0  ;;  %2788 = vmatpush1.bf16.msra.mxu1 %v2787_v5  ;;  %v2232_v43 = vld [vmem:[%s4037_s9 + $0xb8] sm:$0xff] }
 0x1c9   : > { %v1702_v53 = vadd.f32 %v3630_v47, %v1471_v50  ;;  %v1473_v54 = vpop.f32.mrb[19].mxu0  ;;  %2789 = vmatprep.subr.bf16.mxu1 %v2964_v29 }
 0x1ca   : > { %v1703_v57 = vadd.f32 %v3634_v48, %v1473_v54  ;;  %2000 = vmatprep.mubr.f32.mxu1 %v1765_v49 }
 0x1cb   : > { %2001 = vmatmul.mubr.f32.gmra.mrb[48].mxu1 %v1764_v52  ;;  %v1766_v61 = vmax.f32 %v1702_v53, 0.0  ;;  %v2799_v52 = vpack.c.bf16 %v2232_v43, %v2231_v36  ;;  %v2237_v43 = vld [vmem:[%s4037_s9 + $0xe0] sm:$0xff] }
 0x1cc   : > { %v1767_v58 = vmax.f32 %v1703_v57, 0.0  ;;  %v1477_v59 = vpop.f32.mrb[20].mxu0  ;;  %2791 = vmatpush1.bf16.msra.mxu1 %v2790_v51  ;;  %v2234_v57 = vld [vmem:[%s4037_s9 + $0xc8] sm:$0xff] }
 0x1cd   : > { %v1704_v62 = vadd.f32 %v3630_v47, %v1477_v59  ;;  %v1479_v63 = vpop.f32.mrb[21].mxu0  ;;  %2792 = vmatprep.subr.bf16.mxu1 %v2964_v29 }
 0x1ce   : > { %v1705_v3 = vadd.f32 %v3634_v48, %v1479_v63  ;;  %2006 = vmatprep.mubr.f32.mxu1 %v1767_v58 }
 0x1cf   : > { %2007 = vmatmul.mubr.f32.gmra.mrb[50].mxu1 %v1766_v61  ;;  %v1768_v7 = vmax.f32 %v1704_v62, 0.0  ;;  %v2802_v61 = vpack.c.bf16 %v2234_v57, %v2233_v56 }
 0x1d0   : > { %v1769_v4 = vmax.f32 %v1705_v3, 0.0  ;;  %v1483_v5 = vpop.f32.mrb[22].mxu0  ;;  %2794 = vmatpush1.bf16.msra.mxu1 %v2793_v60  ;;  %v2236_v3 = vld [vmem:[%s4037_s9 + $0xd8] sm:$0xff] }
 0x1d1   : > { %v1706_v8 = vadd.f32 %v3630_v47, %v1483_v5  ;;  %v1485_v9 = vpop.f32.mrb[23].mxu0  ;;  %2795 = vmatprep.subr.bf16.mxu1 %v2964_v29 }
 0x1d2   : > { %v1707_v49 = vadd.f32 %v3634_v48, %v1485_v9  ;;  %2012 = vmatprep.mubr.f32.mxu1 %v1769_v4 }
 0x1d3   : > { %2013 = vmatmul.mubr.f32.gmra.mrb[52].mxu1 %v1768_v7  ;;  %v1770_v53 = vmax.f32 %v1706_v8, 0.0  ;;  %v2805_v7 = vpack.c.bf16 %v2236_v3, %v2235_v1 }
 0x1d4   : > { %v1771_v50 = vmax.f32 %v1707_v49, 0.0  ;;  %v1489_v51 = vpop.f32.mrb[24].mxu0  ;;  %2797 = vmatpush1.bf16.msra.mxu1 %v2796_v6  ;;  %v2238_v49 = vld [vmem:[%s4037_s9 + $0xe8] sm:$0xff] }
 0x1d5   : > { %v1708_v54 = vadd.f32 %v3630_v47, %v1489_v51  ;;  %v1491_v55 = vpop.f32.mrb[25].mxu0  ;;  %2798 = vmatprep.subr.bf16.mxu1 %v2964_v29 }
 0x1d6   : > { %v1709_v58 = vadd.f32 %v3634_v48, %v1491_v55  ;;  %2018 = vmatprep.mubr.f32.mxu1 %v1771_v50 }
 0x1d7   : > { %2019 = vmatmul.mubr.f32.gmra.mrb[54].mxu1 %v1770_v53  ;;  %v1772_v62 = vmax.f32 %v1708_v54, 0.0  ;;  %v2808_v53 = vpack.c.bf16 %v2238_v49, %v2237_v43 }
 0x1d8   : > { %v1773_v59 = vmax.f32 %v1709_v58, 0.0  ;;  %v1495_v60 = vpop.f32.mrb[26].mxu0  ;;  %2800 = vmatpush1.bf16.msra.mxu1 %v2799_v52 }
 0x1d9   : > { %v1710_v63 = vadd.f32 %v3630_v47, %v1495_v60  ;;  %v1497_v0 = vpop.f32.mrb[27].mxu0  ;;  %2801 = vmatprep.subr.bf16.mxu1 %v2964_v29 }
 0x1da   : > { %v1711_v4 = vadd.f32 %v3634_v48, %v1497_v0  ;;  %2024 = vmatprep.mubr.f32.mxu1 %v1773_v59 }
 0x1db   : > { %2025 = vmatmul.mubr.f32.gmra.mrb[56].mxu1 %v1772_v62  ;;  %v1774_v8 = vmax.f32 %v1710_v63, 0.0 }
 0x1dc   : > { %v1775_v5 = vmax.f32 %v1711_v4, 0.0  ;;  %v1501_v6 = vpop.f32.mrb[28].mxu0  ;;  %2803 = vmatpush1.bf16.msra.mxu1 %v2802_v61 }
 0x1dd   : > { %v1712_v9 = vadd.f32 %v3630_v47, %v1501_v6  ;;  %v1503_v36 = vpop.f32.mrb[29].mxu0  ;;  %2804 = vmatprep.subr.bf16.mxu1 %v2964_v29 }
 0x1de   : > { %v1713_v50 = vadd.f32 %v3634_v48, %v1503_v36  ;;  %2030 = vmatprep.mubr.f32.mxu1 %v1775_v5 }
 0x1df   : > { %2031 = vmatmul.mubr.f32.gmra.mrb[58].mxu1 %v1774_v8  ;;  %v1776_v54 = vmax.f32 %v1712_v9, 0.0 }
 0x1e0   : > { %v1777_v51 = vmax.f32 %v1713_v50, 0.0  ;;  %v1507_v52 = vpop.f32.mrb[30].mxu0  ;;  %2806 = vmatpush1.bf16.msra.mxu1 %v2805_v7 }
 0x1e1   : > { %v1714_v55 = vadd.f32 %v3630_v47, %v1507_v52  ;;  %v1509_v56 = vpop.f32.mrb[31].mxu0  ;;  %2807 = vmatprep.subr.bf16.mxu1 %v2964_v29 }
 0x1e2   : > { %v1715_v57 = vadd.f32 %v3634_v48, %v1509_v56  ;;  %2036 = vmatprep.mubr.f32.mxu1 %v1777_v51 }
 0x1e3   : > { %2037 = vmatmul.mubr.f32.gmra.mrb[60].mxu1 %v1776_v54  ;;  %v1778_v60 = vmax.f32 %v1714_v55, 0.0 }
 0x1e4   : > { %v1779_v58 = vmax.f32 %v1715_v57, 0.0  ;;  %v1513_v59 = vpop.f32.mrb[32].mxu0  ;;  %2809 = vmatpush1.bf16.msra.mxu1 %v2808_v53 }
 0x1e5   : > { %v2815_v61 = vadd.f32 %v1513_v59, %v3556_v10  ;;  %v1515_v62 = vpop.f32.mrb[33].mxu0  ;;  %2810 = vmatprep.subr.bf16.mxu1 %v2964_v29 }
 0x1e6   : > { %v2816_v63 = vadd.f32 %v1515_v62, %v3558_v11  ;;  %2042 = vmatprep.mubr.f32.mxu1 %v1779_v58 }
 0x1e7   : > { %v1716_v0 = vadd.f32 %v2815_v61, %v3630_v47  ;;  %2043 = vmatmul.mubr.f32.gmra.mrb[62].mxu1 %v1778_v60 }
 0x1e8   : > { %v1717_v1 = vadd.f32 %v2816_v63, %v3634_v48  ;;  %v1519_v3 = vpop.f32.mrb[34].mxu0 }
 0x1e9   : > { %v2817_v4 = vadd.f32 %v1519_v3, %v3560_v12  ;;  %v1521_v5 = vpop.f32.mrb[35].mxu0  ;;  %v1780_v8 = vmax.f32 %v1716_v0, 0.0 }
 0x1ea   : > { %v1781_v6 = vmax.f32 %v1717_v1, 0.0  ;;  %v2818_v7 = vadd.f32 %v1521_v5, %v3562_v13 }
 0x1eb   : > { %v1718_v10 = vadd.f32 %v2817_v4, %v3630_v47 }
 0x1ec   : > { %v1719_v29 = vadd.f32 %v2818_v7, %v3634_v48  ;;  %v1525_v9 = vpop.f32.mrb[36].mxu0  ;;  %2048 = vmatprep.mubr.f32.mxu1 %v1781_v6 }
 0x1ed   : > { %v2819_v11 = vadd.f32 %v1525_v9, %v3564_v14  ;;  %v1527_v36 = vpop.f32.mrb[37].mxu0  ;;  %2049 = vmatmul.mubr.f32.gmra.mrb[64].mxu1 %v1780_v8  ;;  %v1782_v50 = vmax.f32 %v1718_v10, 0.0 }
 0x1ee   : > { %v1783_v43 = vmax.f32 %v1719_v29, 0.0  ;;  %v2820_v49 = vadd.f32 %v1527_v36, %v3566_v15 }
 0x1ef   : > { %v1720_v12 = vadd.f32 %v2819_v11, %v3630_v47  ;;  %v2240_v11 = vld [vmem:[%s4037_s9 + $0xf8] sm:$0xff] }
 0x1f0   : > { %v1721_v51 = vadd.f32 %v2820_v49, %v3634_v48  ;;  %v1531_v13 = vpop.f32.mrb[38].mxu0  ;;  %2054 = vmatprep.mubr.f32.mxu1 %v1783_v43 }
 0x1f1   : > { %v2821_v52 = vadd.f32 %v1531_v13, %v3568_v16  ;;  %v1533_v53 = vpop.f32.mrb[39].mxu0  ;;  %2055 = vmatmul.mubr.f32.gmra.mrb[66].mxu1 %v1782_v50  ;;  %v1784_v14 = vmax.f32 %v1720_v12, 0.0 }
 0x1f2   : > { %v1785_v54 = vmax.f32 %v1721_v51, 0.0  ;;  %v2822_v55 = vadd.f32 %v1533_v53, %v3570_v17 }
 0x1f3   : > { %v1722_v56 = vadd.f32 %v2821_v52, %v3630_v47 }
 0x1f4   : > { %v1723_v57 = vadd.f32 %v2822_v55, %v3634_v48  ;;  %v1537_v15 = vpop.f32.mrb[40].mxu0  ;;  %2060 = vmatprep.mubr.f32.mxu1 %v1785_v54 }
 0x1f5   : > { %v2823_v58 = vadd.f32 %v1537_v15, %v3572_v2  ;;  %v1539_v59 = vpop.f32.mrb[41].mxu0  ;;  %2061 = vmatmul.mubr.f32.gmra.mrb[68].mxu1 %v1784_v14  ;;  %v1786_v16 = vmax.f32 %v1722_v56, 0.0 }
 0x1f6   : > { %v1787_v60 = vmax.f32 %v1723_v57, 0.0  ;;  %v2824_v61 = vadd.f32 %v1539_v59, %v3574_v18 }
 0x1f7   : > { %v1724_v62 = vadd.f32 %v2823_v58, %v3630_v47 }
 0x1f8   : > { %v1725_v63 = vadd.f32 %v2824_v61, %v3634_v48  ;;  %v1543_v17 = vpop.f32.mrb[42].mxu0  ;;  %2066 = vmatprep.mubr.f32.mxu1 %v1787_v60 }
 0x1f9   : > { %v2825_v0 = vadd.f32 %v1543_v17, %v3576_v19  ;;  %v1545_v1 = vpop.f32.mrb[43].mxu0  ;;  %2067 = vmatmul.mubr.f32.gmra.mrb[70].mxu1 %v1786_v16  ;;  %v1788_v2 = vmax.f32 %v1724_v62, 0.0 }
 0x1fa   : > { %v1789_v3 = vmax.f32 %v1725_v63, 0.0  ;;  %v2826_v4 = vadd.f32 %v1545_v1, %v3578_v20  ;;  %v2239_v20 = vld [vmem:[%s4037_s9 + $0xf0] sm:$0xff] }
 0x1fb   : > { %v1726_v5 = vadd.f32 %v2825_v0, %v3630_v47 }
 0x1fc   : > { %v1727_v6 = vadd.f32 %v2826_v4, %v3634_v48  ;;  %v1549_v18 = vpop.f32.mrb[44].mxu0  ;;  %2072 = vmatprep.mubr.f32.mxu1 %v1789_v3 }
 0x1fd   : > { %v2827_v7 = vadd.f32 %v1549_v18, %v3580_v21  ;;  %v1551_v8 = vpop.f32.mrb[45].mxu0  ;;  %2073 = vmatmul.mubr.f32.gmra.mrb[72].mxu1 %v1788_v2  ;;  %v1790_v19 = vmax.f32 %v1726_v5, 0.0  ;;  %v2811_v21 = vpack.c.bf16 %v2240_v11, %v2239_v20 }
 0x1fe   : > { %v1791_v10 = vmax.f32 %v1727_v6, 0.0  ;;  %v2828_v29 = vadd.f32 %v1551_v8, %v3582_v22 }
 0x1ff   : > { %v1728_v9 = vadd.f32 %v2827_v7, %v3630_v47  ;;  %2812 = vmatpush1.bf16.msra.mxu1 %v2811_v21 }
 0x200   : > { %v1729_v36 = vadd.f32 %v2828_v29, %v3634_v48  ;;  %v1555_v43 = vpop.f32.mrb[46].mxu0  ;;  %2078 = vmatprep.mubr.f32.mxu1 %v1791_v10 }
 0x201   : > { %v2829_v49 = vadd.f32 %v1555_v43, %v3584_v23  ;;  %v1557_v50 = vpop.f32.mrb[47].mxu0  ;;  %2079 = vmatmul.mubr.f32.gmra.mrb[74].mxu1 %v1790_v19  ;;  %v1792_v51 = vmax.f32 %v1728_v9, 0.0 }
 0x202   : > { %v1793_v22 = vmax.f32 %v1729_v36, 0.0  ;;  %v2830_v12 = vadd.f32 %v1557_v50, %v3586_v24 }
 0x203   : > { %v1730_v13 = vadd.f32 %v2829_v49, %v3630_v47 }
 0x204   : > { %v1731_v52 = vadd.f32 %v2830_v12, %v3634_v48  ;;  %v1561_v53 = vpop.f32.mrb[48].mxu0  ;;  %2084 = vmatprep.mubr.f32.mxu1 %v1793_v22 }
 0x205   : > { %v2831_v54 = vadd.f32 %v1561_v53, %v3588_v25  ;;  %v1563_v55 = vpop.f32.mrb[49].mxu0  ;;  %2085 = vmatmul.mubr.f32.gmra.mrb[76].mxu1 %v1792_v51  ;;  %v1794_v56 = vmax.f32 %v1730_v13, 0.0 }
 0x206   : > { %v1795_v14 = vmax.f32 %v1731_v52, 0.0  ;;  %v2832_v23 = vadd.f32 %v1563_v55, %v3590_v26 }
 0x207   : > { %v1732_v57 = vadd.f32 %v2831_v54, %v3630_v47 }
 0x208   : > { %v1733_v24 = vadd.f32 %v2832_v23, %v3634_v48  ;;  %v1567_v15 = vpop.f32.mrb[50].mxu0  ;;  %2090 = vmatprep.mubr.f32.mxu1 %v1795_v14 }
 0x209   : > { %v2833_v58 = vadd.f32 %v1567_v15, %v3592_v27  ;;  %v1569_v59 = vpop.f32.mrb[51].mxu0  ;;  %2091 = vmatmul.mubr.f32.gmra.mrb[78].mxu1 %v1794_v56  ;;  %v1796_v25 = vmax.f32 %v1732_v57, 0.0 }
 0x20a   : > { %v1797_v60 = vmax.f32 %v1733_v24, 0.0  ;;  %v2834_v61 = vadd.f32 %v1569_v59, %v3594_v28 }
 0x20b   : > { %v1734_v16 = vadd.f32 %v2833_v58, %v3630_v47 }
 0x20c   : > { %v1735_v62 = vadd.f32 %v2834_v61, %v3634_v48  ;;  %v1573_v26 = vpop.f32.mrb[52].mxu0  ;;  %2096 = vmatprep.mubr.f32.mxu1 %v1797_v60 }
 0x20d   : > { %v2835_v63 = vadd.f32 %v1573_v26, %v3597_v30  ;;  %v1575_v17 = vpop.f32.mrb[53].mxu0  ;;  %2097 = vmatmul.mubr.f32.gmra.mrb[80].mxu1 %v1796_v25  ;;  %v1798_v27 = vmax.f32 %v1734_v16, 0.0 }
 0x20e   : > { %v1799_v0 = vmax.f32 %v1735_v62, 0.0  ;;  %v2836_v1 = vadd.f32 %v1575_v17, %v3599_v31 }
 0x20f   : > { %v1736_v3 = vadd.f32 %v2835_v63, %v3630_v47 }
 0x210   : > { %v1737_v4 = vadd.f32 %v2836_v1, %v3634_v48  ;;  %v1579_v28 = vpop.f32.mrb[54].mxu0  ;;  %2102 = vmatprep.mubr.f32.mxu1 %v1799_v0 }
 0x211   : > { %v2837_v2 = vadd.f32 %v1579_v28, %v3601_v32  ;;  %v1581_v5 = vpop.f32.mrb[55].mxu0  ;;  %2103 = vmatmul.mubr.f32.gmra.mrb[82].mxu1 %v1798_v27  ;;  %v1800_v30 = vmax.f32 %v1736_v3, 0.0 }
 0x212   : > { %v1801_v6 = vmax.f32 %v1737_v4, 0.0  ;;  %v2838_v18 = vadd.f32 %v1581_v5, %v3603_v33 }
 0x213   : > { %v1738_v7 = vadd.f32 %v2837_v2, %v3630_v47 }
 0x214   : > { %v1739_v8 = vadd.f32 %v2838_v18, %v3634_v48  ;;  %v1585_v31 = vpop.f32.mrb[56].mxu0  ;;  %2108 = vmatprep.mubr.f32.mxu1 %v1801_v6 }
 0x215   : > { %v2839_v10 = vadd.f32 %v1585_v31, %v3605_v34  ;;  %v1587_v29 = vpop.f32.mrb[57].mxu0  ;;  %2109 = vmatmul.mubr.f32.gmra.mrb[84].mxu1 %v1800_v30  ;;  %v1802_v32 = vmax.f32 %v1738_v7, 0.0 }
 0x216   : > { %v1803_v19 = vmax.f32 %v1739_v8, 0.0  ;;  %v2840_v9 = vadd.f32 %v1587_v29, %v3607_v35 }
 0x217   : > { %v1740_v20 = vadd.f32 %v2839_v10, %v3630_v47 }
 0x218   : > { %v1741_v11 = vadd.f32 %v2840_v9, %v3634_v48  ;;  %v1591_v33 = vpop.f32.mrb[58].mxu0  ;;  %2114 = vmatprep.mubr.f32.mxu1 %v1803_v19 }
 0x219   : > { %v2841_v36 = vadd.f32 %v1591_v33, %v3609_v37  ;;  %v1593_v43 = vpop.f32.mrb[59].mxu0  ;;  %2115 = vmatmul.mubr.f32.gmra.mrb[86].mxu1 %v1802_v32  ;;  %v1804_v34 = vmax.f32 %v1740_v20, 0.0 }
 0x21a   : > { %v1805_v21 = vmax.f32 %v1741_v11, 0.0  ;;  %v2842_v49 = vadd.f32 %v1593_v43, %v3611_v38 }
 0x21b   : > { %v1742_v50 = vadd.f32 %v2841_v36, %v3630_v47 }
 0x21c   : > { %v1743_v22 = vadd.f32 %v2842_v49, %v3634_v48  ;;  %v1597_v35 = vpop.f32.mrb[60].mxu0  ;;  %2120 = vmatprep.mubr.f32.mxu1 %v1805_v21 }
 0x21d   : > { %v2843_v12 = vadd.f32 %v1597_v35, %v3615_v40  ;;  %v1599_v51 = vpop.f32.mrb[61].mxu0  ;;  %2121 = vmatmul.mubr.f32.gmra.mrb[88].mxu1 %v1804_v34  ;;  %v1806_v37 = vmax.f32 %v1742_v50, 0.0 }
 0x21e   : > { %v1807_v13 = vmax.f32 %v1743_v22, 0.0  ;;  %v2844_v52 = vadd.f32 %v1599_v51, %v3617_v41 }
 0x21f   : > { %v1744_v53 = vadd.f32 %v2843_v12, %v3630_v47 }
 0x220   : > { %v1745_v54 = vadd.f32 %v2844_v52, %v3634_v48  ;;  %v1603_v38 = vpop.f32.mrb[62].mxu0  ;;  %2126 = vmatprep.mubr.f32.mxu1 %v1807_v13 }
 0x221   : > { %v2845_v55 = vadd.f32 %v1603_v38, %v3624_v45  ;;  %v1605_v14 = vpop.f32.mrb[63].mxu0  ;;  %2127 = vmatmul.mubr.f32.gmra.mrb[90].mxu1 %v1806_v37  ;;  %v1808_v40 = vmax.f32 %v1744_v53, 0.0  ;;  %v1876_v45 = vld [vmem:[%s4036_s8] sm:$0x3] }
 0x222   : > { %v1809_v23 = vmax.f32 %v1745_v54, 0.0  ;;  %v2846_v56 = vadd.f32 %v1605_v14, %v3626_v46  ;;  %v3848_v58 = vrot.slane %v1876_v45, %v1676_v42  ;;  %v3852_v46 = vrot.slane %v1876_v45, %v1680_v44 }
 0x223   : > { %v1746_v57 = vadd.f32 %v2845_v55, %v3630_v47 }
 0x224   : > { %v1747_v24 = vadd.f32 %v2846_v56, %v3634_v48  ;;  %2132 = vmatprep.mubr.f32.mxu1 %v1809_v23 }
 0x225   : > { %2133 = vmatmul.mubr.f32.gmra.mrb[92].mxu1 %v1808_v40  ;;  %v1810_v15 = vmax.f32 %v1746_v57, 0.0 }
 0x226   : > { %v1811_v41 = vmax.f32 %v1747_v24, 0.0 }
 0x228   : > { %2138 = vmatprep.mubr.f32.mxu1 %v1811_v41 }
 0x229   : > { %2139 = vmatmul.mubr.f32.gmra.mrb[94].mxu1 %v1810_v15 }
 0x27e   : > { %v1954_v47 = vpop.f32.mrb[32].mxu1 }
 0x27f   : > { %v1955_v48 = vadd.f32 %v1954_v47, %v3848_v58  ;;  %v1956_v59 = vpop.f32.mrb[33].mxu1 }
 0x280   : > { %v1957_v60 = vadd.f32 %v1956_v59, %v3852_v46 }
 0x281   : > { %v2145_v16 = vmax.f32 %v1955_v48, 0.0 }
 0x282   : > { %v2146_v61 = vmax.f32 %v1957_v60, 0.0  ;;  %v1960_v25 = vpop.f32.mrb[34].mxu1 }
 0x283   : > { %v1961_v62 = vadd.f32 %v1960_v25, %v3848_v58  ;;  %v1962_v26 = vpop.f32.mrb[35].mxu1 }
 0x284   : > { %v1963_v63 = vadd.f32 %v1962_v26, %v3852_v46  ;;  %2312 = vmatprep.mubr.f32.mxu1 %v2146_v61 }
 0x285   : > { %2313 = vmatmul.mubr.f32.vlgmr.msra.gmra.mrb[96].mxu1 %v2145_v16  ;;  %v2147_v44 = vmax.f32 %v1961_v62, 0.0 }
 0x286   : > { %v2148_v42 = vmax.f32 %v1963_v63, 0.0  ;;  %v1966_v39 = vpop.f32.mrb[36].mxu1 }
 0x287   : > { %v1967_v17 = vadd.f32 %v1966_v39, %v3848_v58  ;;  %v1968_v0 = vpop.f32.mrb[37].mxu1 }
 0x288   : > { %v1969_v1 = vadd.f32 %v1968_v0, %v3852_v46  ;;  %2317 = vmatprep.mubr.f32.mxu1 %v2148_v42 }
 0x289   : > { %2318 = vmatmul.mubr.f32.gmra.mrb[98].mxu1 %v2147_v44  ;;  %v2149_v4 = vmax.f32 %v1967_v17, 0.0 }
 0x28a   : > { %v2150_v27 = vmax.f32 %v1969_v1, 0.0  ;;  %v1972_v3 = vpop.f32.mrb[38].mxu1 }
 0x28b   : > { %v1973_v28 = vadd.f32 %v1972_v3, %v3848_v58  ;;  %v1974_v2 = vpop.f32.mrb[39].mxu1 }
 0x28c   : > { %v1975_v5 = vadd.f32 %v1974_v2, %v3852_v46  ;;  %2322 = vmatprep.mubr.f32.mxu1 %v2150_v27 }
 0x28d   : > { %2323 = vmatmul.mubr.f32.gmra.mrb[100].mxu1 %v2149_v4  ;;  %v2151_v30 = vmax.f32 %v1973_v28, 0.0 }
 0x28e   : > { %v2152_v6 = vmax.f32 %v1975_v5, 0.0  ;;  %v1978_v18 = vpop.f32.mrb[40].mxu1 }
 0x28f   : > { %v1979_v7 = vadd.f32 %v1978_v18, %v3848_v58  ;;  %v1980_v8 = vpop.f32.mrb[41].mxu1 }
 0x290   : > { %v1981_v31 = vadd.f32 %v1980_v8, %v3852_v46  ;;  %2327 = vmatprep.mubr.f32.mxu1 %v2152_v6 }
 0x291   : > { %2328 = vmatmul.mubr.f32.gmra.mrb[102].mxu1 %v2151_v30  ;;  %v2153_v19 = vmax.f32 %v1979_v7, 0.0 }
 0x292   : > { %v2154_v10 = vmax.f32 %v1981_v31, 0.0  ;;  %v1984_v29 = vpop.f32.mrb[42].mxu1 }
 0x293   : > { %v1985_v9 = vadd.f32 %v1984_v29, %v3848_v58  ;;  %v1986_v32 = vpop.f32.mrb[43].mxu1 }
 0x294   : > { %v1987_v20 = vadd.f32 %v1986_v32, %v3852_v46  ;;  %2332 = vmatprep.mubr.f32.mxu1 %v2154_v10 }
 0x295   : > { %2333 = vmatmul.mubr.f32.gmra.mrb[104].mxu1 %v2153_v19  ;;  %v2155_v36 = vmax.f32 %v1985_v9, 0.0 }
 0x296   : > { %v2156_v11 = vmax.f32 %v1987_v20, 0.0  ;;  %v1990_v33 = vpop.f32.mrb[44].mxu1 }
 0x297   : > { %v1991_v43 = vadd.f32 %v1990_v33, %v3848_v58  ;;  %v1992_v21 = vpop.f32.mrb[45].mxu1 }
 0x298   : > { %v1993_v49 = vadd.f32 %v1992_v21, %v3852_v46  ;;  %2337 = vmatprep.mubr.f32.mxu1 %v2156_v11 }
 0x299   : > { %2338 = vmatmul.mubr.f32.gmra.mrb[106].mxu1 %v2155_v36  ;;  %v2157_v22 = vmax.f32 %v1991_v43, 0.0 }
 0x29a   : > { %v2158_v34 = vmax.f32 %v1993_v49, 0.0  ;;  %v1996_v50 = vpop.f32.mrb[46].mxu1 }
 0x29b   : > { %v1997_v35 = vadd.f32 %v1996_v50, %v3848_v58  ;;  %v1998_v12 = vpop.f32.mrb[47].mxu1 }
 0x29c   : > { %v1999_v51 = vadd.f32 %v1998_v12, %v3852_v46  ;;  %2342 = vmatprep.mubr.f32.mxu1 %v2158_v34 }
 0x29d   : > { %2343 = vmatmul.mubr.f32.gmra.mrb[108].mxu1 %v2157_v22  ;;  %v2159_v37 = vmax.f32 %v1997_v35, 0.0 }
 0x29e   : > { %v2160_v13 = vmax.f32 %v1999_v51, 0.0  ;;  %v2002_v52 = vpop.f32.mrb[48].mxu1 }
 0x29f   : > { %v2003_v53 = vadd.f32 %v2002_v52, %v3848_v58  ;;  %v2004_v54 = vpop.f32.mrb[49].mxu1 }
 0x2a0   : > { %v2005_v38 = vadd.f32 %v2004_v54, %v3852_v46  ;;  %2347 = vmatprep.mubr.f32.mxu1 %v2160_v13 }
 0x2a1   : > { %2348 = vmatmul.mubr.f32.gmra.mrb[110].mxu1 %v2159_v37  ;;  %v2161_v23 = vmax.f32 %v2003_v53, 0.0 }
 0x2a2   : > { %v2162_v55 = vmax.f32 %v2005_v38, 0.0  ;;  %v2008_v14 = vpop.f32.mrb[50].mxu1 }
 0x2a3   : > { %v2009_v56 = vadd.f32 %v2008_v14, %v3848_v58  ;;  %v2010_v40 = vpop.f32.mrb[51].mxu1 }
 0x2a4   : > { %v2011_v57 = vadd.f32 %v2010_v40, %v3852_v46  ;;  %2352 = vmatprep.mubr.f32.mxu1 %v2162_v55 }
 0x2a5   : > { %2353 = vmatmul.mubr.f32.gmra.mrb[112].mxu1 %v2161_v23  ;;  %v2163_v15 = vmax.f32 %v2009_v56, 0.0 }
 0x2a6   : > { %v2164_v24 = vmax.f32 %v2011_v57, 0.0  ;;  %v2014_v41 = vpop.f32.mrb[52].mxu1 }
 0x2a7   : > { %v2015_v45 = vadd.f32 %v2014_v41, %v3848_v58  ;;  %v2016_v47 = vpop.f32.mrb[53].mxu1 }
 0x2a8   : > { %v2017_v48 = vadd.f32 %v2016_v47, %v3852_v46  ;;  %2357 = vmatprep.mubr.f32.mxu1 %v2164_v24 }
 0x2a9   : > { %2358 = vmatmul.mubr.f32.gmra.mrb[114].mxu1 %v2163_v15  ;;  %v2165_v61 = vmax.f32 %v2015_v45, 0.0 }
 0x2aa   : > { %v2166_v59 = vmax.f32 %v2017_v48, 0.0  ;;  %v2020_v60 = vpop.f32.mrb[54].mxu1 }
 0x2ab   : > { %v2021_v25 = vadd.f32 %v2020_v60, %v3848_v58  ;;  %v2022_v16 = vpop.f32.mrb[55].mxu1 }
 0x2ac   : > { %v2023_v62 = vadd.f32 %v2022_v16, %v3852_v46  ;;  %2362 = vmatprep.mubr.f32.mxu1 %v2166_v59 }
 0x2ad   : > { %2363 = vmatmul.mubr.f32.gmra.mrb[116].mxu1 %v2165_v61  ;;  %v2167_v42 = vmax.f32 %v2021_v25, 0.0 }
 0x2ae   : > { %v2168_v26 = vmax.f32 %v2023_v62, 0.0  ;;  %v2026_v63 = vpop.f32.mrb[56].mxu1 }
 0x2af   : > { %v2027_v39 = vadd.f32 %v2026_v63, %v3848_v58  ;;  %v2028_v44 = vpop.f32.mrb[57].mxu1 }
 0x2b0   : > { %v2029_v17 = vadd.f32 %v2028_v44, %v3852_v46  ;;  %2367 = vmatprep.mubr.f32.mxu1 %v2168_v26 }
 0x2b1   : > { %2368 = vmatmul.mubr.f32.gmra.mrb[118].mxu1 %v2167_v42  ;;  %v2169_v27 = vmax.f32 %v2027_v39, 0.0 }
 0x2b2   : > { %v2170_v0 = vmax.f32 %v2029_v17, 0.0  ;;  %v2032_v1 = vpop.f32.mrb[58].mxu1 }
 0x2b3   : > { %v2033_v3 = vadd.f32 %v2032_v1, %v3848_v58  ;;  %v2034_v4 = vpop.f32.mrb[59].mxu1 }
 0x2b4   : > { %v2035_v28 = vadd.f32 %v2034_v4, %v3852_v46  ;;  %2372 = vmatprep.mubr.f32.mxu1 %v2170_v0 }
 0x2b5   : > { %2373 = vmatmul.mubr.f32.gmra.mrb[120].mxu1 %v2169_v27  ;;  %v2171_v6 = vmax.f32 %v2033_v3, 0.0 }
 0x2b6   : > { %v2172_v2 = vmax.f32 %v2035_v28, 0.0  ;;  %v2038_v5 = vpop.f32.mrb[60].mxu1 }
 0x2b7   : > { %v2039_v18 = vadd.f32 %v2038_v5, %v3848_v58  ;;  %v2040_v30 = vpop.f32.mrb[61].mxu1 }
 0x2b8   : > { %v2041_v7 = vadd.f32 %v2040_v30, %v3852_v46  ;;  %2377 = vmatprep.mubr.f32.mxu1 %v2172_v2 }
 0x2b9   : > { %2378 = vmatmul.mubr.f32.gmra.mrb[122].mxu1 %v2171_v6  ;;  %v2173_v10 = vmax.f32 %v2039_v18, 0.0 }
 0x2ba   : > { %v2174_v8 = vmax.f32 %v2041_v7, 0.0  ;;  %v2044_v31 = vpop.f32.mrb[62].mxu1 }
 0x2bb   : > { %v2045_v29 = vadd.f32 %v2044_v31, %v3848_v58  ;;  %v2046_v19 = vpop.f32.mrb[63].mxu1 }
 0x2bc   : > { %v2047_v9 = vadd.f32 %v2046_v19, %v3852_v46  ;;  %2382 = vmatprep.mubr.f32.mxu1 %v2174_v8 }
 0x2bd   : > { %2383 = vmatmul.mubr.f32.gmra.mrb[124].mxu1 %v2173_v10  ;;  %v2175_v20 = vmax.f32 %v2045_v29, 0.0 }
 0x2be   : > { %v2176_v32 = vmax.f32 %v2047_v9, 0.0 }
 0x2c0   : > { %v2050_v11 = vpop.f32.mrb[64].mxu1  ;;  %2387 = vmatprep.mubr.f32.mxu1 %v2176_v32 }
 0x2c1   : > { %v2051_v33 = vadd.f32 %v2050_v11, %v3848_v58  ;;  %v2052_v36 = vpop.f32.mrb[65].mxu1  ;;  %2388 = vmatmul.mubr.f32.gmra.mrb[126].mxu1 %v2175_v20 }
 0x2c2   : > { %v2053_v43 = vadd.f32 %v2052_v36, %v3852_v46 }
 0x2c3   : > { %v2177_v34 = vmax.f32 %v2051_v33, 0.0 }
 0x2c4   : > { %v2178_v21 = vmax.f32 %v2053_v43, 0.0  ;;  %v2056_v49 = vpop.f32.mrb[66].mxu1 }
 0x2c5   : > { %v2057_v50 = vadd.f32 %v2056_v49, %v3848_v58  ;;  %v2058_v22 = vpop.f32.mrb[67].mxu1 }
 0x2c6   : > { %v2059_v35 = vadd.f32 %v2058_v22, %v3852_v46  ;;  %2392 = vmatprep.mubr.f32.mxu1 %v2178_v21 }
 0x2c7   : > { %2393 = vmatmul.mubr.f32.gmra.mrb[128].mxu1 %v2177_v34  ;;  %v2179_v13 = vmax.f32 %v2057_v50, 0.0 }
 0x2c8   : > { %v2180_v12 = vmax.f32 %v2059_v35, 0.0  ;;  %v2062_v51 = vpop.f32.mrb[68].mxu1 }
 0x2c9   : > { %v2063_v52 = vadd.f32 %v2062_v51, %v3848_v58  ;;  %v2064_v37 = vpop.f32.mrb[69].mxu1 }
 0x2ca   : > { %v2065_v53 = vadd.f32 %v2064_v37, %v3852_v46  ;;  %2397 = vmatprep.mubr.f32.mxu1 %v2180_v12 }
 0x2cb   : > { %2398 = vmatmul.mubr.f32.gmra.mrb[130].mxu1 %v2179_v13  ;;  %v2181_v55 = vmax.f32 %v2063_v52, 0.0 }
 0x2cc   : > { %v2182_v54 = vmax.f32 %v2065_v53, 0.0  ;;  %v2068_v38 = vpop.f32.mrb[70].mxu1 }
 0x2cd   : > { %v2069_v14 = vadd.f32 %v2068_v38, %v3848_v58  ;;  %v2070_v23 = vpop.f32.mrb[71].mxu1 }
 0x2ce   : > { %v2071_v56 = vadd.f32 %v2070_v23, %v3852_v46  ;;  %2402 = vmatprep.mubr.f32.mxu1 %v2182_v54 }
 0x2cf   : > { %2403 = vmatmul.mubr.f32.gmra.mrb[132].mxu1 %v2181_v55  ;;  %v2183_v24 = vmax.f32 %v2069_v14, 0.0 }
 0x2d0   : > { %v2184_v40 = vmax.f32 %v2071_v56, 0.0  ;;  %v2074_v57 = vpop.f32.mrb[72].mxu1 }
 0x2d1   : > { %v2075_v41 = vadd.f32 %v2074_v57, %v3848_v58  ;;  %v2076_v15 = vpop.f32.mrb[73].mxu1 }
 0x2d2   : > { %v2077_v45 = vadd.f32 %v2076_v15, %v3852_v46  ;;  %2407 = vmatprep.mubr.f32.mxu1 %v2184_v40 }
 0x2d3   : > { %2408 = vmatmul.mubr.f32.gmra.mrb[134].mxu1 %v2183_v24  ;;  %v2185_v59 = vmax.f32 %v2075_v41, 0.0 }
 0x2d4   : > { %v2186_v47 = vmax.f32 %v2077_v45, 0.0  ;;  %v2080_v48 = vpop.f32.mrb[74].mxu1 }
 0x2d5   : > { %v2081_v60 = vadd.f32 %v2080_v48, %v3848_v58  ;;  %v2082_v61 = vpop.f32.mrb[75].mxu1 }
 0x2d6   : > { %v2083_v25 = vadd.f32 %v2082_v61, %v3852_v46  ;;  %2412 = vmatprep.mubr.f32.mxu1 %v2186_v47 }
 0x2d7   : > { %2413 = vmatmul.mubr.f32.gmra.mrb[136].mxu1 %v2185_v59  ;;  %v2187_v26 = vmax.f32 %v2081_v60, 0.0 }
 0x2d8   : > { %v2188_v16 = vmax.f32 %v2083_v25, 0.0  ;;  %v2086_v62 = vpop.f32.mrb[76].mxu1 }
 0x2d9   : > { %v2087_v63 = vadd.f32 %v2086_v62, %v3848_v58  ;;  %v2088_v42 = vpop.f32.mrb[77].mxu1 }
 0x2da   : > { %v2089_v39 = vadd.f32 %v2088_v42, %v3852_v46  ;;  %2417 = vmatprep.mubr.f32.mxu1 %v2188_v16  ;;  %v3921_v16 = vld [vmem:[%s4038_s10] ss:$0 sm:$0xff] }
 0x2db   : > { %2418 = vmatmul.mubr.f32.gmra.mrb[138].mxu1 %v2187_v26  ;;  %v2189_v0 = vmax.f32 %v2087_v63, 0.0 }
 0x2dc   : > { %v2190_v44 = vmax.f32 %v2089_v39, 0.0  ;;  %v2092_v17 = vpop.f32.mrb[78].mxu1 }
 0x2dd   : > { %v2093_v1 = vadd.f32 %v2092_v17, %v3848_v58  ;;  %v2094_v27 = vpop.f32.mrb[79].mxu1 }
 0x2de   : > { %v2095_v3 = vadd.f32 %v2094_v27, %v3852_v46  ;;  %2422 = vmatprep.mubr.f32.mxu1 %v2190_v44 }
 0x2df   : > { %2423 = vmatmul.mubr.f32.gmra.mrb[140].mxu1 %v2189_v0  ;;  %v2191_v2 = vmax.f32 %v2093_v1, 0.0 }
 0x2e0   : > { %v2192_v4 = vmax.f32 %v2095_v3, 0.0  ;;  %v2098_v28 = vpop.f32.mrb[80].mxu1 }
 0x2e1   : > { %v2099_v5 = vadd.f32 %v2098_v28, %v3848_v58  ;;  %v2100_v6 = vpop.f32.mrb[81].mxu1 }
 0x2e2   : > { %v2101_v18 = vadd.f32 %v2100_v6, %v3852_v46  ;;  %2427 = vmatprep.mubr.f32.mxu1 %v2192_v4 }
 0x2e3   : > { %2428 = vmatmul.mubr.f32.gmra.mrb[142].mxu1 %v2191_v2  ;;  %v2193_v8 = vmax.f32 %v2099_v5, 0.0 }
 0x2e4   : > { %v2194_v30 = vmax.f32 %v2101_v18, 0.0  ;;  %v2104_v7 = vpop.f32.mrb[82].mxu1 }
 0x2e5   : > { %v2105_v31 = vadd.f32 %v2104_v7, %v3848_v58  ;;  %v2106_v10 = vpop.f32.mrb[83].mxu1 }
 0x2e6   : > { %v2107_v29 = vadd.f32 %v2106_v10, %v3852_v46  ;;  %2432 = vmatprep.mubr.f32.mxu1 %v2194_v30 }
 0x2e7   : > { %2433 = vmatmul.mubr.f32.gmra.mrb[144].mxu1 %v2193_v8  ;;  %v2195_v32 = vmax.f32 %v2105_v31, 0.0 }
 0x2e8   : > { %v2196_v19 = vmax.f32 %v2107_v29, 0.0  ;;  %v2110_v9 = vpop.f32.mrb[84].mxu1 }
 0x2e9   : > { %v2111_v20 = vadd.f32 %v2110_v9, %v3848_v58  ;;  %v2112_v11 = vpop.f32.mrb[85].mxu1 }
 0x2ea   : > { %v2113_v33 = vadd.f32 %v2112_v11, %v3852_v46  ;;  %2437 = vmatprep.mubr.f32.mxu1 %v2196_v19 }
 0x2eb   : > { %2438 = vmatmul.mubr.f32.gmra.mrb[146].mxu1 %v2195_v32  ;;  %v2197_v21 = vmax.f32 %v2111_v20, 0.0 }
 0x2ec   : > { %v2198_v36 = vmax.f32 %v2113_v33, 0.0  ;;  %v2116_v43 = vpop.f32.mrb[86].mxu1 }
 0x2ed   : > { %v2117_v49 = vadd.f32 %v2116_v43, %v3848_v58  ;;  %v2118_v34 = vpop.f32.mrb[87].mxu1 }
 0x2ee   : > { %v2119_v50 = vadd.f32 %v2118_v34, %v3852_v46  ;;  %2442 = vmatprep.mubr.f32.mxu1 %v2198_v36 }
 0x2ef   : > { %2443 = vmatmul.mubr.f32.gmra.mrb[148].mxu1 %v2197_v21  ;;  %v2199_v12 = vmax.f32 %v2117_v49, 0.0 }
 0x2f0   : > { %v2200_v22 = vmax.f32 %v2119_v50, 0.0  ;;  %v2122_v35 = vpop.f32.mrb[88].mxu1 }
 0x2f1   : > { %v2123_v51 = vadd.f32 %v2122_v35, %v3848_v58  ;;  %v2124_v13 = vpop.f32.mrb[89].mxu1 }
 0x2f2   : > { %v2125_v52 = vadd.f32 %v2124_v13, %v3852_v46  ;;  %2447 = vmatprep.mubr.f32.mxu1 %v2200_v22 }
 0x2f3   : > { %2448 = vmatmul.mubr.f32.gmra.mrb[150].mxu1 %v2199_v12  ;;  %v2201_v54 = vmax.f32 %v2123_v51, 0.0 }
 0x2f4   : > { %v2202_v37 = vmax.f32 %v2125_v52, 0.0  ;;  %v2128_v53 = vpop.f32.mrb[90].mxu1 }
 0x2f5   : > { %v2129_v38 = vadd.f32 %v2128_v53, %v3848_v58  ;;  %v2130_v55 = vpop.f32.mrb[91].mxu1 }
 0x2f6   : > { %v2131_v14 = vadd.f32 %v2130_v55, %v3852_v46  ;;  %2452 = vmatprep.mubr.f32.mxu1 %v2202_v37 }
 0x2f7   : > { %2453 = vmatmul.mubr.f32.gmra.mrb[152].mxu1 %v2201_v54  ;;  %v2203_v40 = vmax.f32 %v2129_v38, 0.0 }
 0x2f8   : > { %v2204_v23 = vmax.f32 %v2131_v14, 0.0  ;;  %v2134_v56 = vpop.f32.mrb[92].mxu1 }
 0x2f9   : > { %v2135_v57 = vadd.f32 %v2134_v56, %v3848_v58  ;;  %v2136_v24 = vpop.f32.mrb[93].mxu1 }
 0x2fa   : > { %v2137_v41 = vadd.f32 %v2136_v24, %v3852_v46  ;;  %2457 = vmatprep.mubr.f32.mxu1 %v2204_v23 }
 0x2fb   : > { %2458 = vmatmul.mubr.f32.gmra.mrb[154].mxu1 %v2203_v40  ;;  %v2205_v47 = vmax.f32 %v2135_v57, 0.0 }
 0x2fc   : > { %v2206_v15 = vmax.f32 %v2137_v41, 0.0  ;;  %v2140_v45 = vpop.f32.mrb[94].mxu1 }
 0x2fd   : > { %v2141_v48 = vadd.f32 %v2140_v45, %v3848_v58  ;;  %v2142_v59 = vpop.f32.mrb[95].mxu1 }
 0x2fe   : > { %v2143_v60 = vadd.f32 %v2142_v59, %v3852_v46  ;;  %2462 = vmatprep.mubr.f32.mxu1 %v2206_v15 }
 0x2ff   : > { %2463 = vmatmul.mubr.f32.gmra.mrb[156].mxu1 %v2205_v47  ;;  %v2207_v25 = vmax.f32 %v2141_v48, 0.0 }
 0x300   : > { %v2208_v61 = vmax.f32 %v2143_v60, 0.0 }
 0x302   : > { %2467 = vmatprep.mubr.f32.mxu1 %v2208_v61 }
 0x303   : > { %2468 = vmatmul.mubr.f32.gmra.mrb[158].mxu1 %v2207_v25 }
 0x358   : > { %v2314_v58 = vpop.f32.mrb[96].mxu1 }
 0x359   : > { %v2315_v46 = vadd.f32 %v3921_v16, %v2314_v58  ;;  %v2316_v62 = vpop.f32.mrb[97].mxu1 }
 0x35b   : > { %2473 = vst.msk [vmem:[%s3927_s23] sm:$0xff] %vm894_vm2, %v2315_v46 }
 0x35c   : > { %v2319_v26 = vpop.f32.mrb[98].mxu1 }
 0x35d   : > { %v2320_v63 = vadd.f32 %v3921_v16, %v2319_v26  ;;  %v2321_v42 = vpop.f32.mrb[99].mxu1 }
 0x35f   : > { %2474 = vst.msk [vmem:[%s3927_s23 + $0x8] sm:$0xff] %vm894_vm2, %v2320_v63 }
 0x360   : > { %v2324_v39 = vpop.f32.mrb[100].mxu1 }
 0x361   : > { %v2325_v44 = vadd.f32 %v3921_v16, %v2324_v39  ;;  %v2326_v17 = vpop.f32.mrb[101].mxu1 }
 0x363   : > { %2475 = vst.msk [vmem:[%s3927_s23 + $0x10] sm:$0xff] %vm894_vm2, %v2325_v44 }
 0x364   : > { %v2329_v0 = vpop.f32.mrb[102].mxu1 }
 0x365   : > { %v2330_v1 = vadd.f32 %v3921_v16, %v2329_v0  ;;  %v2331_v27 = vpop.f32.mrb[103].mxu1 }
 0x367   : > { %2476 = vst.msk [vmem:[%s3927_s23 + $0x18] sm:$0xff] %vm894_vm2, %v2330_v1 }
 0x368   : > { %v2334_v3 = vpop.f32.mrb[104].mxu1 }
 0x369   : > { %v2335_v4 = vadd.f32 %v3921_v16, %v2334_v3  ;;  %v2336_v28 = vpop.f32.mrb[105].mxu1 }
 0x36b   : > { %2477 = vst.msk [vmem:[%s3927_s23 + $0x20] sm:$0xff] %vm894_vm2, %v2335_v4 }
 0x36c   : > { %v2339_v2 = vpop.f32.mrb[106].mxu1 }
 0x36d   : > { %v2340_v5 = vadd.f32 %v3921_v16, %v2339_v2  ;;  %v2341_v6 = vpop.f32.mrb[107].mxu1 }
 0x36f   : > { %2478 = vst.msk [vmem:[%s3927_s23 + $0x28] sm:$0xff] %vm894_vm2, %v2340_v5 }
 0x370   : > { %v2344_v18 = vpop.f32.mrb[108].mxu1 }
 0x371   : > { %v2345_v30 = vadd.f32 %v3921_v16, %v2344_v18  ;;  %v2346_v7 = vpop.f32.mrb[109].mxu1 }
 0x373   : > { %2479 = vst.msk [vmem:[%s3927_s23 + $0x30] sm:$0xff] %vm894_vm2, %v2345_v30 }
 0x374   : > { %v2349_v8 = vpop.f32.mrb[110].mxu1 }
 0x375   : > { %v2350_v31 = vadd.f32 %v3921_v16, %v2349_v8  ;;  %v2351_v10 = vpop.f32.mrb[111].mxu1 }
 0x377   : > { %2480 = vst.msk [vmem:[%s3927_s23 + $0x38] sm:$0xff] %vm894_vm2, %v2350_v31 }
 0x378   : > { %v2354_v29 = vpop.f32.mrb[112].mxu1 }
 0x379   : > { %v2355_v19 = vadd.f32 %v3921_v16, %v2354_v29  ;;  %v2356_v9 = vpop.f32.mrb[113].mxu1 }
 0x37b   : > { %2481 = vst.msk [vmem:[%s3927_s23 + $0x40] sm:$0xff] %vm894_vm2, %v2355_v19 }
 0x37c   : > { %v2359_v32 = vpop.f32.mrb[114].mxu1 }
 0x37d   : > { %v2360_v20 = vadd.f32 %v3921_v16, %v2359_v32  ;;  %v2361_v11 = vpop.f32.mrb[115].mxu1 }
 0x37f   : > { %2482 = vst.msk [vmem:[%s3927_s23 + $0x48] sm:$0xff] %vm894_vm2, %v2360_v20 }
 0x380   : > { %v2364_v33 = vpop.f32.mrb[116].mxu1 }
 0x381   : > { %v2365_v36 = vadd.f32 %v3921_v16, %v2364_v33  ;;  %v2366_v43 = vpop.f32.mrb[117].mxu1 }
 0x383   : > { %2483 = vst.msk [vmem:[%s3927_s23 + $0x50] sm:$0xff] %vm894_vm2, %v2365_v36 }
 0x384   : > { %v2369_v21 = vpop.f32.mrb[118].mxu1 }
 0x385   : > { %v2370_v49 = vadd.f32 %v3921_v16, %v2369_v21  ;;  %v2371_v34 = vpop.f32.mrb[119].mxu1 }
 0x387   : > { %2484 = vst.msk [vmem:[%s3927_s23 + $0x58] sm:$0xff] %vm894_vm2, %v2370_v49 }
 0x388   : > { %v2374_v50 = vpop.f32.mrb[120].mxu1 }
 0x389   : > { %v2375_v22 = vadd.f32 %v3921_v16, %v2374_v50  ;;  %v2376_v35 = vpop.f32.mrb[121].mxu1 }
 0x38b   : > { %2485 = vst.msk [vmem:[%s3927_s23 + $0x60] sm:$0xff] %vm894_vm2, %v2375_v22 }
 0x38c   : > { %v2379_v12 = vpop.f32.mrb[122].mxu1 }
 0x38d   : > { %v2380_v51 = vadd.f32 %v3921_v16, %v2379_v12  ;;  %v2381_v13 = vpop.f32.mrb[123].mxu1 }
 0x38f   : > { %2486 = vst.msk [vmem:[%s3927_s23 + $0x68] sm:$0xff] %vm894_vm2, %v2380_v51 }
 0x390   : > { %v2384_v52 = vpop.f32.mrb[124].mxu1 }
 0x391   : > { %v2385_v37 = vadd.f32 %v3921_v16, %v2384_v52  ;;  %v2386_v53 = vpop.f32.mrb[125].mxu1 }
 0x393   : > { %2487 = vst.msk [vmem:[%s3927_s23 + $0x70] sm:$0xff] %vm894_vm2, %v2385_v37 }
 0x394   : > { %v2389_v54 = vpop.f32.mrb[126].mxu1 }
 0x395   : > { %v2390_v38 = vadd.f32 %v3921_v16, %v2389_v54  ;;  %v2391_v55 = vpop.f32.mrb[127].mxu1 }
 0x397   : > { %2488 = vst.msk [vmem:[%s3927_s23 + $0x78] sm:$0xff] %vm894_vm2, %v2390_v38 }
 0x39a   : > { %v2394_v14 = vpop.f32.mrb[128].mxu1 }
 0x39b   : > { %v2395_v23 = vadd.f32 %v3921_v16, %v2394_v14  ;;  %v2396_v56 = vpop.f32.mrb[129].mxu1 }
 0x39d   : > { %2489 = vst.msk [vmem:[%s3927_s23 + $0x80] sm:$0xff] %vm894_vm2, %v2395_v23 }
 0x39e   : > { %v2399_v40 = vpop.f32.mrb[130].mxu1 }
 0x39f   : > { %v2400_v57 = vadd.f32 %v3921_v16, %v2399_v40  ;;  %v2401_v24 = vpop.f32.mrb[131].mxu1 }
 0x3a1   : > { %2490 = vst.msk [vmem:[%s3927_s23 + $0x88] sm:$0xff] %vm894_vm2, %v2400_v57 }
 0x3a2   : > { %v2404_v41 = vpop.f32.mrb[132].mxu1 }
 0x3a3   : > { %v2405_v15 = vadd.f32 %v3921_v16, %v2404_v41  ;;  %v2406_v45 = vpop.f32.mrb[133].mxu1 }
 0x3a5   : > { %2491 = vst.msk [vmem:[%s3927_s23 + $0x90] sm:$0xff] %vm894_vm2, %v2405_v15 }
 0x3a6   : > { %v2409_v47 = vpop.f32.mrb[134].mxu1 }
 0x3a7   : > { %v2410_v48 = vadd.f32 %v3921_v16, %v2409_v47  ;;  %v2411_v59 = vpop.f32.mrb[135].mxu1 }
 0x3a9   : > { %2492 = vst.msk [vmem:[%s3927_s23 + $0x98] sm:$0xff] %vm894_vm2, %v2410_v48 }
 0x3aa   : > { %v2414_v60 = vpop.f32.mrb[136].mxu1 }
 0x3ab   : > { %v2415_v61 = vadd.f32 %v3921_v16, %v2414_v60  ;;  %v2416_v25 = vpop.f32.mrb[137].mxu1 }
 0x3ad   : > { %2493 = vst.msk [vmem:[%s3927_s23 + $0xa0] sm:$0xff] %vm894_vm2, %v2415_v61 }
 0x3ae   : > { %v2419_v58 = vpop.f32.mrb[138].mxu1 }
 0x3af   : > { %v2420_v46 = vadd.f32 %v3921_v16, %v2419_v58  ;;  %v2421_v62 = vpop.f32.mrb[139].mxu1 }
 0x3b1   : > { %2494 = vst.msk [vmem:[%s3927_s23 + $0xa8] sm:$0xff] %vm894_vm2, %v2420_v46 }
 0x3b2   : > { %v2424_v26 = vpop.f32.mrb[140].mxu1 }
 0x3b3   : > { %v2425_v63 = vadd.f32 %v3921_v16, %v2424_v26  ;;  %v2426_v42 = vpop.f32.mrb[141].mxu1 }
 0x3b5   : > { %2495 = vst.msk [vmem:[%s3927_s23 + $0xb0] sm:$0xff] %vm894_vm2, %v2425_v63 }
 0x3b6   : > { %v2429_v39 = vpop.f32.mrb[142].mxu1 }
 0x3b7   : > { %v2430_v44 = vadd.f32 %v3921_v16, %v2429_v39  ;;  %v2431_v17 = vpop.f32.mrb[143].mxu1 }
 0x3b9   : > { %2496 = vst.msk [vmem:[%s3927_s23 + $0xb8] sm:$0xff] %vm894_vm2, %v2430_v44 }
 0x3ba   : > { %v2434_v0 = vpop.f32.mrb[144].mxu1 }
 0x3bb   : > { %v2435_v1 = vadd.f32 %v3921_v16, %v2434_v0  ;;  %v2436_v27 = vpop.f32.mrb[145].mxu1 }
 0x3bd   : > { %2497 = vst.msk [vmem:[%s3927_s23 + $0xc0] sm:$0xff] %vm894_vm2, %v2435_v1 }
 0x3be   : > { %v2439_v3 = vpop.f32.mrb[146].mxu1 }
 0x3bf   : > { %v2440_v4 = vadd.f32 %v3921_v16, %v2439_v3  ;;  %v2441_v28 = vpop.f32.mrb[147].mxu1 }
 0x3c1   : > { %2498 = vst.msk [vmem:[%s3927_s23 + $0xc8] sm:$0xff] %vm894_vm2, %v2440_v4 }
 0x3c2   : > { %v2444_v2 = vpop.f32.mrb[148].mxu1 }
 0x3c3   : > { %v2445_v5 = vadd.f32 %v3921_v16, %v2444_v2  ;;  %v2446_v6 = vpop.f32.mrb[149].mxu1 }
 0x3c5   : > { %2499 = vst.msk [vmem:[%s3927_s23 + $0xd0] sm:$0xff] %vm894_vm2, %v2445_v5 }
 0x3c6   : > { %v2449_v18 = vpop.f32.mrb[150].mxu1 }
 0x3c7   : > { %v2450_v30 = vadd.f32 %v3921_v16, %v2449_v18  ;;  %v2451_v7 = vpop.f32.mrb[151].mxu1 }
 0x3c9   : > { %2500 = vst.msk [vmem:[%s3927_s23 + $0xd8] sm:$0xff] %vm894_vm2, %v2450_v30 }
 0x3ca   : > { %v2454_v8 = vpop.f32.mrb[152].mxu1 }
 0x3cb   : > { %v2455_v31 = vadd.f32 %v3921_v16, %v2454_v8  ;;  %v2456_v10 = vpop.f32.mrb[153].mxu1 }
 0x3cd   : > { %2501 = vst.msk [vmem:[%s3927_s23 + $0xe0] sm:$0xff] %vm894_vm2, %v2455_v31 }
 0x3ce   : > { %v2459_v29 = vpop.f32.mrb[154].mxu1 }
 0x3cf   : > { %v2460_v19 = vadd.f32 %v3921_v16, %v2459_v29  ;;  %v2461_v9 = vpop.f32.mrb[155].mxu1 }
 0x3d1   : > { %2502 = vst.msk [vmem:[%s3927_s23 + $0xe8] sm:$0xff] %vm894_vm2, %v2460_v19 }
 0x3d2   : > { %v2464_v32 = vpop.f32.mrb[156].mxu1 }
 0x3d3   : > { %v2465_v20 = vadd.f32 %v3921_v16, %v2464_v32  ;;  %v2466_v11 = vpop.f32.mrb[157].mxu1 }
 0x3d5   : > { %2503 = vst.msk [vmem:[%s3927_s23 + $0xf0] sm:$0xff] %vm894_vm2, %v2465_v20 }
 0x3d6   : > { %v2469_v33 = vpop.f32.mrb[158].mxu1 }
 0x3d7   : > { %v2470_v36 = vadd.f32 %v3921_v16, %v2469_v33  ;;  %v2471_v43 = vpop.f32.mrb[159].mxu1 }
 0x3d9   : > { %2504 = vst.msk [vmem:[%s3927_s23 + $0xf8] sm:$0xff] %vm894_vm2, %v2470_v36 }
 0x3da PF: > { %s21_s17 = sadd.s32 1, %s2961_s17  }
 0x3db   : > { %p18_p4 = scmp.ge.s32.totalorder %s21_s17, 4  }
 0x3dd   :  { %20 = sbr.rel (!%p18_p4) target bundleno = 1 (0x1), region = 100 }

</bundles_post_ra>
